<compile_context>
chip_gen: v7x
topology: tpu7x:2x2x1
jax: 0.10.0
libtpu: 0.0.40
codegen_flags: <defaults>
</compile_context>

<pallas_src>
import functools

import jax
import jax.numpy as jnp
import numpy as np
from jax import lax
from jax.experimental import pallas as pl
from jax.experimental.pallas import tpu as pltpu


# ------------------------------ fused kernel --------------------------------

def _fused_downsample_kernel(xp_ref, w1_ref, b1_ref, w2_ref, w3_ref,
                             b2_ref, b3_ref, o_ref, *, Hp, Wp, Cin, Cout2,
                             B_TILE):
    """B_TILE images per grid step; channels on sublanes, flattened spatial on lanes.

    xp_ref : (B_TILE, Cin, 4*M2) bf16 -- per channel, the four 2x2 phases of x
                                         laid contiguously along lanes;
                                         phase p = 2*row_parity + col_parity
    w1_ref : (Cin, Cin)          bf16 -- leading 1x1 conv, (out, in) layout
    b1_ref : (Cin, 1)            f32
    w2_ref : (16, Cout2, Cin)    bf16 -- 4x4 conv taps, tap index = 4*kh + kw
    w3_ref : (Cout2, Cin)        bf16 -- 1x1 conv after the maxpool
    b2_ref : (Cout2, 1)          f32
    b3_ref : (Cout2, 1)          f32
    o_ref  : (B_TILE, 2*Cout2, M2) f32 -- [cv | mpool] along channels
    """
    f32 = jnp.float32
    bf16 = jnp.bfloat16
    M2 = Hp * Wp
    PADL = Wp + 1                      # covers the largest |di*Wp + dj| shift

    # Hoisted lane-index masks for the dj = +/-1 taps (they implement the
    # conv's column zero-padding AND cancel the row-wrap artifact of shifting
    # the flattened spatial index).
    wo = lax.broadcasted_iota(jnp.int32, (1, M2), 1) % Wp
    col_lo = wo >= 1                   # valid when wo - 1 >= 0
    col_hi = wo <= Wp - 2              # valid when wo + 1 <= Wp - 1

    w1 = w1_ref[...]                   # (Cin, Cin)   bf16
    b1 = b1_ref[...]                   # (Cin, 1)     f32
    w3 = w3_ref[...]                   # (Cout2, Cin) bf16
    b2 = b2_ref[...]                   # (Cout2, 1)   f32
    b3 = b3_ref[...]                   # (Cout2, 1)   f32
    zpad = jnp.zeros((Cin, PADL), f32)

    for b in range(B_TILE):            # static unroll; amortizes step overhead
        x_all = xp_ref[b]              # (Cin, 4*M2) bf16

        # ---- mpool branch: 2x2 max in f32 (no bf16 VPU on v5e) + 1x1 conv --
        ph = [x_all[:, p * M2:(p + 1) * M2].astype(f32) for p in range(4)]
        mx = jnp.maximum(jnp.maximum(ph[0], ph[1]), jnp.maximum(ph[2], ph[3]))
        mp_out = jnp.dot(w3, mx.astype(bf16), preferred_element_type=f32)

        # ---- cv branch, step 1: ONE fused 1x1 conv over all four phases ----
        y1_all = jnp.dot(w1, x_all, preferred_element_type=f32) + b1  # (Cin, 4*M2)

        # Lane-padded per-phase slabs: the 16 static tap slices below then
        # never need an explicit row bounds check (rows out of range land in
        # the zero padding).
        ypad = [jnp.concatenate(
                    [zpad, y1_all[:, p * M2:(p + 1) * M2], zpad], axis=-1)
                for p in range(4)]     # each (Cin, M2 + 2*PADL) f32

        # ---- cv branch, step 2: Conv2d(4, stride 2, pad 1) as an implicit
        # im2col = running f32 sum of 16 small dots (no 16x patches buffer).
        # Tap (kh, kw) of output pixel (ho, wo) reads y1_pad[2*ho+kh, 2*wo+kw];
        # in phase coordinates that is phase (alpha, beta) at (ho+di, wo+dj),
        #   alpha = 1 - (kh & 1),  di = kh//2 + (kh & 1) - 1   (same for kw),
        # i.e. a static lane shift by di*Wp + dj plus a column mask.
        acc = jnp.zeros((Cout2, M2), f32)
        for kh in range(4):
            alpha = 1 - (kh & 1)
            di = (kh // 2) + (kh & 1) - 1
            for kw in range(4):
                beta = 1 - (kw & 1)
                dj = (kw // 2) + (kw & 1) - 1
                s = di * Wp + dj
                t = ypad[2 * alpha + beta][:, PADL + s:PADL + s + M2]
                if dj == -1:
                    t = jnp.where(col_lo, t, 0.0)
                elif dj == 1:
                    t = jnp.where(col_hi, t, 0.0)
                acc = acc + jnp.dot(w2_ref[4 * kh + kw], t.astype(bf16),
                                    preferred_element_type=f32)

        # ---- fused [cv | mpool] output, channels-leading, spatial on lanes --
        o_ref[b, pl.ds(0, Cout2), :] = acc + b2
        o_ref[b, pl.ds(Cout2, Cout2), :] = mp_out + b3


# --------------------------- parameters / forward ---------------------------

def init_downsample_params(key, in_channels, out_channels):
    """Deterministic synthetic parameters in PyTorch Conv2d layout (O,I,kh,kw)."""
    c_half = out_channels // 2
    k1, k2, k3, k4, k5, k6 = jax.random.split(key, 6)
    return {
        "w1": 0.1 * jax.random.normal(k1, (in_channels, in_channels, 1, 1), jnp.float32),
        "b1": 0.1 * jax.random.normal(k2, (in_channels,), jnp.float32),
        "w2": 0.1 * jax.random.normal(k3, (c_half, in_channels, 4, 4), jnp.float32),
        "b2": 0.1 * jax.random.normal(k4, (c_half,), jnp.float32),
        "w3": 0.1 * jax.random.normal(k5, (c_half, in_channels, 1, 1), jnp.float32),
        "b3": 0.1 * jax.random.normal(k6, (c_half,), jnp.float32),
    }


def downsample_forward(params, x_nchw, k=2):
    """Pallas implementation of Downsample.forward (use_conv=use_mpool=True)."""
    assert k == 2, "kernel is specialized for the default downsample factor k=2"
    N, Cin, H, W = x_nchw.shape
    assert H % 2 == 0 and W % 2 == 0, "even H, W required (crop input otherwise)"
    Hp, Wp = H // 2, W // 2
    M2 = Hp * Wp
    Cout2 = params["w2"].shape[0]
    Cout = 2 * Cout2

    # Single HBM repack of x: NCHW -> (N, Cin, 4*M2) bf16, 2x2-phase-major
    # along the lane axis (phase = 2*row_parity + col_parity).  bf16 halves the
    # activation DMA bytes of this memory-bound op; the only activation copy
    # outside the kernel (the output needs NO transpose in this layout).
    xp = (x_nchw.reshape(N, Cin, Hp, 2, Wp, 2)
          .transpose(0, 1, 3, 5, 2, 4)
          .reshape(N, Cin, 4 * M2)
          .astype(jnp.bfloat16))

    # Parameters in matmul form (tiny; cast to bf16 once on the host).
    w1_mat = params["w1"][:, :, 0, 0].astype(jnp.bfloat16)               # (Cin, Cin)
    w2_taps = (jnp.transpose(params["w2"], (2, 3, 0, 1))                 # (kh,kw,Cout2,Cin)
               .reshape(16, Cout2, Cin).astype(jnp.bfloat16))
    w3_mat = params["w3"][:, :, 0, 0].astype(jnp.bfloat16)               # (Cout2, Cin)
    b1 = params["b1"].reshape(Cin, 1).astype(jnp.float32)
    b2 = params["b2"].reshape(Cout2, 1).astype(jnp.float32)
    b3 = params["b3"].reshape(Cout2, 1).astype(jnp.float32)

    # Batch tile: process several images per grid step so the ~0.35us
    # per-step overhead is amortized when the per-image block is small.
    B_TILE = 1
    for bt in (8, 4, 2):
        if N % bt == 0:
            B_TILE = bt
            break

    kernel = functools.partial(_fused_downsample_kernel, Hp=Hp, Wp=Wp,
                               Cin=Cin, Cout2=Cout2, B_TILE=B_TILE)

    out_flat = pl.pallas_call(
        kernel,
        out_shape=jax.ShapeDtypeStruct((N, Cout, M2), jnp.float32),
        grid=(N // B_TILE,),
        in_specs=[
            pl.BlockSpec((B_TILE, Cin, 4 * M2), lambda g: (g, 0, 0)),
            pl.BlockSpec((Cin, Cin), lambda g: (0, 0)),
            pl.BlockSpec((Cin, 1), lambda g: (0, 0)),
            pl.BlockSpec((16, Cout2, Cin), lambda g: (0, 0, 0)),
            pl.BlockSpec((Cout2, Cin), lambda g: (0, 0)),
            pl.BlockSpec((Cout2, 1), lambda g: (0, 0)),
            pl.BlockSpec((Cout2, 1), lambda g: (0, 0)),
        ],
        out_specs=pl.BlockSpec((B_TILE, Cout, M2), lambda g: (g, 0, 0)),
        compiler_params=pltpu.CompilerParams(
            dimension_semantics=("parallel",),
            vmem_limit_bytes=32 * 1024 * 1024),
    )(xp, w1_mat, b1, w2_taps, w3_mat, b2, b3)

    # (N, Cout, Hp*Wp) -> NCHW: a free metadata reshape, no transpose.
    return out_flat.reshape(N, Cout, Hp, Wp)


# ------------------------------ reference (JAX) -----------------------------

def reference_forward(params, x_nchw, k=2):
    """Pure-JAX/XLA reference mirroring the PyTorch module, for verification."""
    x = x_nchw.astype(jnp.float32)
    dn1 = lax.conv_dimension_numbers(x.shape, params["w1"].shape,
                                     ("NCHW", "OIHW", "NCHW"))
    y1 = lax.conv_general_dilated(x, params["w1"], (1, 1), "VALID",
                                  dimension_numbers=dn1)
    y1 = y1 + params["b1"][None, :, None, None]
    dn2 = lax.conv_dimension_numbers(y1.shape, params["w2"].shape,
                                     ("NCHW", "OIHW", "NCHW"))
    cv = lax.conv_general_dilated(y1, params["w2"], (k, k), ((1, 1), (1, 1)),
                                  dimension_numbers=dn2)
    cv = cv + params["b2"][None, :, None, None]
    mp = lax.reduce_window(x, -jnp.inf, lax.max,
                           (1, 1, k, k), (1, 1, k, k), "VALID")
    dn3 = lax.conv_dimension_numbers(mp.shape, params["w3"].shape,
                                     ("NCHW", "OIHW", "NCHW"))
    mpc = lax.conv_general_dilated(mp, params["w3"], (1, 1), "VALID",
                                   dimension_numbers=dn3)
    mpc = mpc + params["b3"][None, :, None, None]
    return jnp.concatenate([cv, mpc], axis=1)


# ----------------------------------- main -----------------------------------

if __name__ == "__main__":
    key = jax.random.PRNGKey(0)
    k_x, k_p = jax.random.split(key)

    N, Cin, H, W = 2, 4, 16, 16
    Cout = 8
    x = jax.random.normal(k_x, (N, Cin, H, W), jnp.float32)   # NCHW input
    params = init_downsample_params(k_p, Cin, Cout)

    fwd = jax.jit(downsample_forward)
    out = jax.block_until_ready(fwd(params, x))

    ref = jax.block_until_ready(reference_forward(params, x))
    assert out.shape == (N, Cout, H // 2, W // 2), out.shape
    # bf16 activations/weights on the MXU -> loosened tolerance vs. f32 ref.
    np.testing.assert_allclose(np.asarray(out), np.asarray(ref),
                               rtol=3e-2, atol=3e-2)
    print("KERNEL_OK")
</pallas_src>

<mosaic_0001>
module attributes {stable_mosaic.version = 11 : i64} {
  func.func @_fused_downsample_kernel(%arg0: i32, %arg1: memref<2x4x256xbf16, #tpu.memory_space<vmem>>, %arg2: memref<4x4xbf16, #tpu.memory_space<vmem>>, %arg3: memref<4x1xf32, #tpu.memory_space<vmem>>, %arg4: memref<16x4x4xbf16, #tpu.memory_space<vmem>>, %arg5: memref<4x4xbf16, #tpu.memory_space<vmem>>, %arg6: memref<4x1xf32, #tpu.memory_space<vmem>>, %arg7: memref<4x1xf32, #tpu.memory_space<vmem>>, %arg8: memref<2x8x64xf32, #tpu.memory_space<vmem>>) attributes {dimension_semantics = [#tpu.dimension_semantics<parallel>], iteration_bounds = array<i64: 1>, scalar_prefetch = 0 : i64, scratch_operands = 0 : i64, tpu.core_type = #tpu.core_type<tc>, window_params = [{transform_indices = @transform_0, window_bounds = array<i64: 2, 4, 256>}, {pipeline_mode = #tpu.pipeline_mode<synchronous>, transform_indices = @transform_1, window_bounds = array<i64: 4, 4>}, {pipeline_mode = #tpu.pipeline_mode<synchronous>, transform_indices = @transform_2, window_bounds = array<i64: 4, 1>}, {pipeline_mode = #tpu.pipeline_mode<synchronous>, transform_indices = @transform_3, window_bounds = array<i64: 16, 4, 4>}, {pipeline_mode = #tpu.pipeline_mode<synchronous>, transform_indices = @transform_4, window_bounds = array<i64: 4, 4>}, {pipeline_mode = #tpu.pipeline_mode<synchronous>, transform_indices = @transform_5, window_bounds = array<i64: 4, 1>}, {pipeline_mode = #tpu.pipeline_mode<synchronous>, transform_indices = @transform_6, window_bounds = array<i64: 4, 1>}, {transform_indices = @transform_7, window_bounds = array<i64: 2, 8, 64>}]} {
    %0 = tpu.iota {dimensions = array<i32: 1>} : vector<1x64xi32>
    %c8_i32 = arith.constant 8 : i32
    %c0_i32 = arith.constant 0 : i32
    %1 = arith.cmpi eq, %c8_i32, %c0_i32 : i32
    %c1_i32 = arith.constant 1 : i32
    %2 = arith.select %1, %c1_i32, %c8_i32 : i32
    %3 = vector.broadcast %2 : i32 to vector<1x64xi32>
    %4 = arith.remsi %0, %3 : vector<1x64xi32>
    %c0_i32_0 = arith.constant 0 : i32
    %5 = vector.broadcast %c0_i32_0 : i32 to vector<1x64xi32>
    %6 = arith.cmpi ne, %4, %5 : vector<1x64xi32>
    %c0_i32_1 = arith.constant 0 : i32
    %7 = vector.broadcast %c0_i32_1 : i32 to vector<1x64xi32>
    %8 = arith.cmpi slt, %4, %7 : vector<1x64xi32>
    %c0_i32_2 = arith.constant 0 : i32
    %9 = arith.cmpi slt, %2, %c0_i32_2 : i32
    %10 = vector.broadcast %9 : i1 to vector<1x64xi1>
    %11 = vector.broadcast %10 : vector<1x64xi1> to vector<1x64xi1>
    %12 = arith.xori %8, %11 : vector<1x64xi1>
    %13 = arith.andi %12, %6 : vector<1x64xi1>
    %14 = vector.broadcast %2 : i32 to vector<1x64xi32>
    %15 = arith.addi %4, %14 : vector<1x64xi32>
    %16 = arith.select %13, %15, %4 : vector<1x64xi1>, vector<1x64xi32>
    %c1_i32_3 = arith.constant 1 : i32
    %17 = vector.broadcast %c1_i32_3 : i32 to vector<1x64xi32>
    %18 = arith.cmpi sge, %16, %17 : vector<1x64xi32>
    %c6_i32 = arith.constant 6 : i32
    %19 = vector.broadcast %c6_i32 : i32 to vector<1x64xi32>
    %20 = arith.cmpi sle, %16, %19 : vector<1x64xi32>
    %c0 = arith.constant 0 : index
    %c0_4 = arith.constant 0 : index
    %21 = vector.load %arg2[%c0, %c0_4] : memref<4x4xbf16, #tpu.memory_space<vmem>>, vector<4x4xbf16>
    %c0_5 = arith.constant 0 : index
    %c0_6 = arith.constant 0 : index
    %22 = vector.load %arg3[%c0_5, %c0_6] : memref<4x1xf32, #tpu.memory_space<vmem>>, vector<4x1xf32>
    %c0_7 = arith.constant 0 : index
    %c0_8 = arith.constant 0 : index
    %23 = vector.load %arg5[%c0_7, %c0_8] : memref<4x4xbf16, #tpu.memory_space<vmem>>, vector<4x4xbf16>
    %c0_9 = arith.constant 0 : index
    %c0_10 = arith.constant 0 : index
    %24 = vector.load %arg6[%c0_9, %c0_10] : memref<4x1xf32, #tpu.memory_space<vmem>>, vector<4x1xf32>
    %c0_11 = arith.constant 0 : index
    %c0_12 = arith.constant 0 : index
    %25 = vector.load %arg7[%c0_11, %c0_12] : memref<4x1xf32, #tpu.memory_space<vmem>>, vector<4x1xf32>
    %cst = arith.constant 0.000000e+00 : f32
    %26 = vector.broadcast %cst : f32 to vector<4x9xf32>
    %c0_13 = arith.constant 0 : index
    %c0_14 = arith.constant 0 : index
    %c0_15 = arith.constant 0 : index
    %27 = vector.load %arg1[%c0_13, %c0_14, %c0_15] : memref<2x4x256xbf16, #tpu.memory_space<vmem>>, vector<1x4x256xbf16>
    %28 = vector.shape_cast %27 : vector<1x4x256xbf16> to vector<4x256xbf16>
    %29 = vector.extract_strided_slice %28 {offsets = [0, 0], sizes = [4, 64], strides = [1, 1]} : vector<4x256xbf16> to vector<4x64xbf16>
    %30 = arith.extf %29 : vector<4x64xbf16> to vector<4x64xf32>
    %31 = vector.extract_strided_slice %28 {offsets = [0, 64], sizes = [4, 64], strides = [1, 1]} : vector<4x256xbf16> to vector<4x64xbf16>
    %32 = arith.extf %31 : vector<4x64xbf16> to vector<4x64xf32>
    %33 = vector.extract_strided_slice %28 {offsets = [0, 128], sizes = [4, 64], strides = [1, 1]} : vector<4x256xbf16> to vector<4x64xbf16>
    %34 = arith.extf %33 : vector<4x64xbf16> to vector<4x64xf32>
    %35 = vector.extract_strided_slice %28 {offsets = [0, 192], sizes = [4, 64], strides = [1, 1]} : vector<4x256xbf16> to vector<4x64xbf16>
    %36 = arith.extf %35 : vector<4x64xbf16> to vector<4x64xf32>
    %37 = arith.maximumf %30, %32 : vector<4x64xf32>
    %38 = arith.maximumf %34, %36 : vector<4x64xf32>
    %39 = arith.maximumf %37, %38 : vector<4x64xf32>
    %40 = arith.truncf %39 : vector<4x64xf32> to vector<4x64xbf16>
    %cst_16 = arith.constant dense<0.000000e+00> : vector<4x64xf32>
    %41 = tpu.matmul %23, %40, %cst_16 {dimension_numbers = #tpu.dot_dimension_numbers<[1], [0], [0], [1], [0, 0, 1, 1], [], []>} : vector<4x4xbf16>, vector<4x64xbf16>, vector<4x64xf32> -> vector<4x64xf32>
    %cst_17 = arith.constant dense<0.000000e+00> : vector<4x256xf32>
    %42 = tpu.matmul %21, %28, %cst_17 {dimension_numbers = #tpu.dot_dimension_numbers<[1], [0], [0], [1], [0, 0, 1, 1], [], []>} : vector<4x4xbf16>, vector<4x256xbf16>, vector<4x256xf32> -> vector<4x256xf32>
    %43 = vector.broadcast %22 : vector<4x1xf32> to vector<4x256xf32>
    %44 = arith.addf %42, %43 : vector<4x256xf32>
    %45 = vector.extract_strided_slice %44 {offsets = [0, 0], sizes = [4, 64], strides = [1, 1]} : vector<4x256xf32> to vector<4x64xf32>
    %46 = tpu.concatenate %26, %45, %26 in 1 : vector<4x9xf32>, vector<4x64xf32>, vector<4x9xf32> -> vector<4x82xf32>
    %47 = vector.extract_strided_slice %44 {offsets = [0, 64], sizes = [4, 64], strides = [1, 1]} : vector<4x256xf32> to vector<4x64xf32>
    %48 = tpu.concatenate %26, %47, %26 in 1 : vector<4x9xf32>, vector<4x64xf32>, vector<4x9xf32> -> vector<4x82xf32>
    %49 = vector.extract_strided_slice %44 {offsets = [0, 128], sizes = [4, 64], strides = [1, 1]} : vector<4x256xf32> to vector<4x64xf32>
    %50 = tpu.concatenate %26, %49, %26 in 1 : vector<4x9xf32>, vector<4x64xf32>, vector<4x9xf32> -> vector<4x82xf32>
    %51 = vector.extract_strided_slice %44 {offsets = [0, 192], sizes = [4, 64], strides = [1, 1]} : vector<4x256xf32> to vector<4x64xf32>
    %52 = tpu.concatenate %26, %51, %26 in 1 : vector<4x9xf32>, vector<4x64xf32>, vector<4x9xf32> -> vector<4x82xf32>
    %cst_18 = arith.constant 0.000000e+00 : f32
    %53 = vector.broadcast %cst_18 : f32 to vector<4x64xf32>
    %54 = vector.extract_strided_slice %52 {offsets = [0, 0], sizes = [4, 64], strides = [1, 1]} : vector<4x82xf32> to vector<4x64xf32>
    %cst_19 = arith.constant 0.000000e+00 : f32
    %55 = vector.shape_cast %18 : vector<1x64xi1> to vector<1x64xi1>
    %56 = vector.broadcast %55 : vector<1x64xi1> to vector<4x64xi1>
    %57 = vector.broadcast %cst_19 : f32 to vector<4x64xf32>
    %58 = arith.select %56, %54, %57 : vector<4x64xi1>, vector<4x64xf32>
    %c0_20 = arith.constant 0 : index
    %c0_21 = arith.constant 0 : index
    %c0_22 = arith.constant 0 : index
    %59 = vector.load %arg4[%c0_20, %c0_21, %c0_22] : memref<16x4x4xbf16, #tpu.memory_space<vmem>>, vector<1x4x4xbf16>
    %60 = vector.shape_cast %59 : vector<1x4x4xbf16> to vector<4x4xbf16>
    %61 = arith.truncf %58 : vector<4x64xf32> to vector<4x64xbf16>
    %cst_23 = arith.constant dense<0.000000e+00> : vector<4x64xf32>
    %62 = tpu.matmul %60, %61, %cst_23 {dimension_numbers = #tpu.dot_dimension_numbers<[1], [0], [0], [1], [0, 0, 1, 1], [], []>} : vector<4x4xbf16>, vector<4x64xbf16>, vector<4x64xf32> -> vector<4x64xf32>
    %63 = arith.addf %53, %62 : vector<4x64xf32>
    %64 = vector.extract_strided_slice %50 {offsets = [0, 1], sizes = [4, 64], strides = [1, 1]} : vector<4x82xf32> to vector<4x64xf32>
    %c1 = arith.constant 1 : index
    %c0_24 = arith.constant 0 : index
    %c0_25 = arith.constant 0 : index
    %65 = vector.load %arg4[%c1, %c0_24, %c0_25] : memref<16x4x4xbf16, #tpu.memory_space<vmem>>, vector<1x4x4xbf16>
    %66 = vector.shape_cast %65 : vector<1x4x4xbf16> to vector<4x4xbf16>
    %67 = arith.truncf %64 : vector<4x64xf32> to vector<4x64xbf16>
    %cst_26 = arith.constant dense<0.000000e+00> : vector<4x64xf32>
    %68 = tpu.matmul %66, %67, %cst_26 {dimension_numbers = #tpu.dot_dimension_numbers<[1], [0], [0], [1], [0, 0, 1, 1], [], []>} : vector<4x4xbf16>, vector<4x64xbf16>, vector<4x64xf32> -> vector<4x64xf32>
    %69 = arith.addf %63, %68 : vector<4x64xf32>
    %70 = vector.extract_strided_slice %52 {offsets = [0, 1], sizes = [4, 64], strides = [1, 1]} : vector<4x82xf32> to vector<4x64xf32>
    %c2 = arith.constant 2 : index
    %c0_27 = arith.constant 0 : index
    %c0_28 = arith.constant 0 : index
    %71 = vector.load %arg4[%c2, %c0_27, %c0_28] : memref<16x4x4xbf16, #tpu.memory_space<vmem>>, vector<1x4x4xbf16>
    %72 = vector.shape_cast %71 : vector<1x4x4xbf16> to vector<4x4xbf16>
    %73 = arith.truncf %70 : vector<4x64xf32> to vector<4x64xbf16>
    %cst_29 = arith.constant dense<0.000000e+00> : vector<4x64xf32>
    %74 = tpu.matmul %72, %73, %cst_29 {dimension_numbers = #tpu.dot_dimension_numbers<[1], [0], [0], [1], [0, 0, 1, 1], [], []>} : vector<4x4xbf16>, vector<4x64xbf16>, vector<4x64xf32> -> vector<4x64xf32>
    %75 = arith.addf %69, %74 : vector<4x64xf32>
    %76 = vector.extract_strided_slice %50 {offsets = [0, 2], sizes = [4, 64], strides = [1, 1]} : vector<4x82xf32> to vector<4x64xf32>
    %cst_30 = arith.constant 0.000000e+00 : f32
    %77 = vector.shape_cast %20 : vector<1x64xi1> to vector<1x64xi1>
    %78 = vector.broadcast %77 : vector<1x64xi1> to vector<4x64xi1>
    %79 = vector.broadcast %cst_30 : f32 to vector<4x64xf32>
    %80 = arith.select %78, %76, %79 : vector<4x64xi1>, vector<4x64xf32>
    %c3 = arith.constant 3 : index
    %c0_31 = arith.constant 0 : index
    %c0_32 = arith.constant 0 : index
    %81 = vector.load %arg4[%c3, %c0_31, %c0_32] : memref<16x4x4xbf16, #tpu.memory_space<vmem>>, vector<1x4x4xbf16>
    %82 = vector.shape_cast %81 : vector<1x4x4xbf16> to vector<4x4xbf16>
    %83 = arith.truncf %80 : vector<4x64xf32> to vector<4x64xbf16>
    %cst_33 = arith.constant dense<0.000000e+00> : vector<4x64xf32>
    %84 = tpu.matmul %82, %83, %cst_33 {dimension_numbers = #tpu.dot_dimension_numbers<[1], [0], [0], [1], [0, 0, 1, 1], [], []>} : vector<4x4xbf16>, vector<4x64xbf16>, vector<4x64xf32> -> vector<4x64xf32>
    %85 = arith.addf %75, %84 : vector<4x64xf32>
    %86 = vector.extract_strided_slice %48 {offsets = [0, 8], sizes = [4, 64], strides = [1, 1]} : vector<4x82xf32> to vector<4x64xf32>
    %cst_34 = arith.constant 0.000000e+00 : f32
    %87 = vector.shape_cast %18 : vector<1x64xi1> to vector<1x64xi1>
    %88 = vector.broadcast %87 : vector<1x64xi1> to vector<4x64xi1>
    %89 = vector.broadcast %cst_34 : f32 to vector<4x64xf32>
    %90 = arith.select %88, %86, %89 : vector<4x64xi1>, vector<4x64xf32>
    %c4 = arith.constant 4 : index
    %c0_35 = arith.constant 0 : index
    %c0_36 = arith.constant 0 : index
    %91 = vector.load %arg4[%c4, %c0_35, %c0_36] : memref<16x4x4xbf16, #tpu.memory_space<vmem>>, vector<1x4x4xbf16>
    %92 = vector.shape_cast %91 : vector<1x4x4xbf16> to vector<4x4xbf16>
    %93 = arith.truncf %90 : vector<4x64xf32> to vector<4x64xbf16>
    %cst_37 = arith.constant dense<0.000000e+00> : vector<4x64xf32>
    %94 = tpu.matmul %92, %93, %cst_37 {dimension_numbers = #tpu.dot_dimension_numbers<[1], [0], [0], [1], [0, 0, 1, 1], [], []>} : vector<4x4xbf16>, vector<4x64xbf16>, vector<4x64xf32> -> vector<4x64xf32>
    %95 = arith.addf %85, %94 : vector<4x64xf32>
    %96 = vector.extract_strided_slice %46 {offsets = [0, 9], sizes = [4, 64], strides = [1, 1]} : vector<4x82xf32> to vector<4x64xf32>
    %c5 = arith.constant 5 : index
    %c0_38 = arith.constant 0 : index
    %c0_39 = arith.constant 0 : index
    %97 = vector.load %arg4[%c5, %c0_38, %c0_39] : memref<16x4x4xbf16, #tpu.memory_space<vmem>>, vector<1x4x4xbf16>
    %98 = vector.shape_cast %97 : vector<1x4x4xbf16> to vector<4x4xbf16>
    %99 = arith.truncf %96 : vector<4x64xf32> to vector<4x64xbf16>
    %cst_40 = arith.constant dense<0.000000e+00> : vector<4x64xf32>
    %100 = tpu.matmul %98, %99, %cst_40 {dimension_numbers = #tpu.dot_dimension_numbers<[1], [0], [0], [1], [0, 0, 1, 1], [], []>} : vector<4x4xbf16>, vector<4x64xbf16>, vector<4x64xf32> -> vector<4x64xf32>
    %101 = arith.addf %95, %100 : vector<4x64xf32>
    %102 = vector.extract_strided_slice %48 {offsets = [0, 9], sizes = [4, 64], strides = [1, 1]} : vector<4x82xf32> to vector<4x64xf32>
    %c6 = arith.constant 6 : index
    %c0_41 = arith.constant 0 : index
    %c0_42 = arith.constant 0 : index
    %103 = vector.load %arg4[%c6, %c0_41, %c0_42] : memref<16x4x4xbf16, #tpu.memory_space<vmem>>, vector<1x4x4xbf16>
    %104 = vector.shape_cast %103 : vector<1x4x4xbf16> to vector<4x4xbf16>
    %105 = arith.truncf %102 : vector<4x64xf32> to vector<4x64xbf16>
    %cst_43 = arith.constant dense<0.000000e+00> : vector<4x64xf32>
    %106 = tpu.matmul %104, %105, %cst_43 {dimension_numbers = #tpu.dot_dimension_numbers<[1], [0], [0], [1], [0, 0, 1, 1], [], []>} : vector<4x4xbf16>, vector<4x64xbf16>, vector<4x64xf32> -> vector<4x64xf32>
    %107 = arith.addf %101, %106 : vector<4x64xf32>
    %108 = vector.extract_strided_slice %46 {offsets = [0, 10], sizes = [4, 64], strides = [1, 1]} : vector<4x82xf32> to vector<4x64xf32>
    %cst_44 = arith.constant 0.000000e+00 : f32
    %109 = vector.shape_cast %20 : vector<1x64xi1> to vector<1x64xi1>
    %110 = vector.broadcast %109 : vector<1x64xi1> to vector<4x64xi1>
    %111 = vector.broadcast %cst_44 : f32 to vector<4x64xf32>
    %112 = arith.select %110, %108, %111 : vector<4x64xi1>, vector<4x64xf32>
    %c7 = arith.constant 7 : index
    %c0_45 = arith.constant 0 : index
    %c0_46 = arith.constant 0 : index
    %113 = vector.load %arg4[%c7, %c0_45, %c0_46] : memref<16x4x4xbf16, #tpu.memory_space<vmem>>, vector<1x4x4xbf16>
    %114 = vector.shape_cast %113 : vector<1x4x4xbf16> to vector<4x4xbf16>
    %115 = arith.truncf %112 : vector<4x64xf32> to vector<4x64xbf16>
    %cst_47 = arith.constant dense<0.000000e+00> : vector<4x64xf32>
    %116 = tpu.matmul %114, %115, %cst_47 {dimension_numbers = #tpu.dot_dimension_numbers<[1], [0], [0], [1], [0, 0, 1, 1], [], []>} : vector<4x4xbf16>, vector<4x64xbf16>, vector<4x64xf32> -> vector<4x64xf32>
    %117 = arith.addf %107, %116 : vector<4x64xf32>
    %118 = vector.extract_strided_slice %52 {offsets = [0, 8], sizes = [4, 64], strides = [1, 1]} : vector<4x82xf32> to vector<4x64xf32>
    %cst_48 = arith.constant 0.000000e+00 : f32
    %119 = vector.shape_cast %18 : vector<1x64xi1> to vector<1x64xi1>
    %120 = vector.broadcast %119 : vector<1x64xi1> to vector<4x64xi1>
    %121 = vector.broadcast %cst_48 : f32 to vector<4x64xf32>
    %122 = arith.select %120, %118, %121 : vector<4x64xi1>, vector<4x64xf32>
    %c8 = arith.constant 8 : index
    %c0_49 = arith.constant 0 : index
    %c0_50 = arith.constant 0 : index
    %123 = vector.load %arg4[%c8, %c0_49, %c0_50] : memref<16x4x4xbf16, #tpu.memory_space<vmem>>, vector<1x4x4xbf16>
    %124 = vector.shape_cast %123 : vector<1x4x4xbf16> to vector<4x4xbf16>
    %125 = arith.truncf %122 : vector<4x64xf32> to vector<4x64xbf16>
    %cst_51 = arith.constant dense<0.000000e+00> : vector<4x64xf32>
    %126 = tpu.matmul %124, %125, %cst_51 {dimension_numbers = #tpu.dot_dimension_numbers<[1], [0], [0], [1], [0, 0, 1, 1], [], []>} : vector<4x4xbf16>, vector<4x64xbf16>, vector<4x64xf32> -> vector<4x64xf32>
    %127 = arith.addf %117, %126 : vector<4x64xf32>
    %128 = vector.extract_strided_slice %50 {offsets = [0, 9], sizes = [4, 64], strides = [1, 1]} : vector<4x82xf32> to vector<4x64xf32>
    %c9 = arith.constant 9 : index
    %c0_52 = arith.constant 0 : index
    %c0_53 = arith.constant 0 : index
    %129 = vector.load %arg4[%c9, %c0_52, %c0_53] : memref<16x4x4xbf16, #tpu.memory_space<vmem>>, vector<1x4x4xbf16>
    %130 = vector.shape_cast %129 : vector<1x4x4xbf16> to vector<4x4xbf16>
    %131 = arith.truncf %128 : vector<4x64xf32> to vector<4x64xbf16>
    %cst_54 = arith.constant dense<0.000000e+00> : vector<4x64xf32>
    %132 = tpu.matmul %130, %131, %cst_54 {dimension_numbers = #tpu.dot_dimension_numbers<[1], [0], [0], [1], [0, 0, 1, 1], [], []>} : vector<4x4xbf16>, vector<4x64xbf16>, vector<4x64xf32> -> vector<4x64xf32>
    %133 = arith.addf %127, %132 : vector<4x64xf32>
    %134 = vector.extract_strided_slice %52 {offsets = [0, 9], sizes = [4, 64], strides = [1, 1]} : vector<4x82xf32> to vector<4x64xf32>
    %c10 = arith.constant 10 : index
    %c0_55 = arith.constant 0 : index
    %c0_56 = arith.constant 0 : index
    %135 = vector.load %arg4[%c10, %c0_55, %c0_56] : memref<16x4x4xbf16, #tpu.memory_space<vmem>>, vector<1x4x4xbf16>
    %136 = vector.shape_cast %135 : vector<1x4x4xbf16> to vector<4x4xbf16>
    %137 = arith.truncf %134 : vector<4x64xf32> to vector<4x64xbf16>
    %cst_57 = arith.constant dense<0.000000e+00> : vector<4x64xf32>
    %138 = tpu.matmul %136, %137, %cst_57 {dimension_numbers = #tpu.dot_dimension_numbers<[1], [0], [0], [1], [0, 0, 1, 1], [], []>} : vector<4x4xbf16>, vector<4x64xbf16>, vector<4x64xf32> -> vector<4x64xf32>
    %139 = arith.addf %133, %138 : vector<4x64xf32>
    %140 = vector.extract_strided_slice %50 {offsets = [0, 10], sizes = [4, 64], strides = [1, 1]} : vector<4x82xf32> to vector<4x64xf32>
    %cst_58 = arith.constant 0.000000e+00 : f32
    %141 = vector.shape_cast %20 : vector<1x64xi1> to vector<1x64xi1>
    %142 = vector.broadcast %141 : vector<1x64xi1> to vector<4x64xi1>
    %143 = vector.broadcast %cst_58 : f32 to vector<4x64xf32>
    %144 = arith.select %142, %140, %143 : vector<4x64xi1>, vector<4x64xf32>
    %c11 = arith.constant 11 : index
    %c0_59 = arith.constant 0 : index
    %c0_60 = arith.constant 0 : index
    %145 = vector.load %arg4[%c11, %c0_59, %c0_60] : memref<16x4x4xbf16, #tpu.memory_space<vmem>>, vector<1x4x4xbf16>
    %146 = vector.shape_cast %145 : vector<1x4x4xbf16> to vector<4x4xbf16>
    %147 = arith.truncf %144 : vector<4x64xf32> to vector<4x64xbf16>
    %cst_61 = arith.constant dense<0.000000e+00> : vector<4x64xf32>
    %148 = tpu.matmul %146, %147, %cst_61 {dimension_numbers = #tpu.dot_dimension_numbers<[1], [0], [0], [1], [0, 0, 1, 1], [], []>} : vector<4x4xbf16>, vector<4x64xbf16>, vector<4x64xf32> -> vector<4x64xf32>
    %149 = arith.addf %139, %148 : vector<4x64xf32>
    %150 = vector.extract_strided_slice %48 {offsets = [0, 16], sizes = [4, 64], strides = [1, 1]} : vector<4x82xf32> to vector<4x64xf32>
    %cst_62 = arith.constant 0.000000e+00 : f32
    %151 = vector.shape_cast %18 : vector<1x64xi1> to vector<1x64xi1>
    %152 = vector.broadcast %151 : vector<1x64xi1> to vector<4x64xi1>
    %153 = vector.broadcast %cst_62 : f32 to vector<4x64xf32>
    %154 = arith.select %152, %150, %153 : vector<4x64xi1>, vector<4x64xf32>
    %c12 = arith.constant 12 : index
    %c0_63 = arith.constant 0 : index
    %c0_64 = arith.constant 0 : index
    %155 = vector.load %arg4[%c12, %c0_63, %c0_64] : memref<16x4x4xbf16, #tpu.memory_space<vmem>>, vector<1x4x4xbf16>
    %156 = vector.shape_cast %155 : vector<1x4x4xbf16> to vector<4x4xbf16>
    %157 = arith.truncf %154 : vector<4x64xf32> to vector<4x64xbf16>
    %cst_65 = arith.constant dense<0.000000e+00> : vector<4x64xf32>
    %158 = tpu.matmul %156, %157, %cst_65 {dimension_numbers = #tpu.dot_dimension_numbers<[1], [0], [0], [1], [0, 0, 1, 1], [], []>} : vector<4x4xbf16>, vector<4x64xbf16>, vector<4x64xf32> -> vector<4x64xf32>
    %159 = arith.addf %149, %158 : vector<4x64xf32>
    %160 = vector.extract_strided_slice %46 {offsets = [0, 17], sizes = [4, 64], strides = [1, 1]} : vector<4x82xf32> to vector<4x64xf32>
    %c13 = arith.constant 13 : index
    %c0_66 = arith.constant 0 : index
    %c0_67 = arith.constant 0 : index
    %161 = vector.load %arg4[%c13, %c0_66, %c0_67] : memref<16x4x4xbf16, #tpu.memory_space<vmem>>, vector<1x4x4xbf16>
    %162 = vector.shape_cast %161 : vector<1x4x4xbf16> to vector<4x4xbf16>
    %163 = arith.truncf %160 : vector<4x64xf32> to vector<4x64xbf16>
    %cst_68 = arith.constant dense<0.000000e+00> : vector<4x64xf32>
    %164 = tpu.matmul %162, %163, %cst_68 {dimension_numbers = #tpu.dot_dimension_numbers<[1], [0], [0], [1], [0, 0, 1, 1], [], []>} : vector<4x4xbf16>, vector<4x64xbf16>, vector<4x64xf32> -> vector<4x64xf32>
    %165 = arith.addf %159, %164 : vector<4x64xf32>
    %166 = vector.extract_strided_slice %48 {offsets = [0, 17], sizes = [4, 64], strides = [1, 1]} : vector<4x82xf32> to vector<4x64xf32>
    %c14 = arith.constant 14 : index
    %c0_69 = arith.constant 0 : index
    %c0_70 = arith.constant 0 : index
    %167 = vector.load %arg4[%c14, %c0_69, %c0_70] : memref<16x4x4xbf16, #tpu.memory_space<vmem>>, vector<1x4x4xbf16>
    %168 = vector.shape_cast %167 : vector<1x4x4xbf16> to vector<4x4xbf16>
    %169 = arith.truncf %166 : vector<4x64xf32> to vector<4x64xbf16>
    %cst_71 = arith.constant dense<0.000000e+00> : vector<4x64xf32>
    %170 = tpu.matmul %168, %169, %cst_71 {dimension_numbers = #tpu.dot_dimension_numbers<[1], [0], [0], [1], [0, 0, 1, 1], [], []>} : vector<4x4xbf16>, vector<4x64xbf16>, vector<4x64xf32> -> vector<4x64xf32>
    %171 = arith.addf %165, %170 : vector<4x64xf32>
    %172 = vector.extract_strided_slice %46 {offsets = [0, 18], sizes = [4, 64], strides = [1, 1]} : vector<4x82xf32> to vector<4x64xf32>
    %cst_72 = arith.constant 0.000000e+00 : f32
    %173 = vector.shape_cast %20 : vector<1x64xi1> to vector<1x64xi1>
    %174 = vector.broadcast %173 : vector<1x64xi1> to vector<4x64xi1>
    %175 = vector.broadcast %cst_72 : f32 to vector<4x64xf32>
    %176 = arith.select %174, %172, %175 : vector<4x64xi1>, vector<4x64xf32>
    %c15 = arith.constant 15 : index
    %c0_73 = arith.constant 0 : index
    %c0_74 = arith.constant 0 : index
    %177 = vector.load %arg4[%c15, %c0_73, %c0_74] : memref<16x4x4xbf16, #tpu.memory_space<vmem>>, vector<1x4x4xbf16>
    %178 = vector.shape_cast %177 : vector<1x4x4xbf16> to vector<4x4xbf16>
    %179 = arith.truncf %176 : vector<4x64xf32> to vector<4x64xbf16>
    %cst_75 = arith.constant dense<0.000000e+00> : vector<4x64xf32>
    %180 = tpu.matmul %178, %179, %cst_75 {dimension_numbers = #tpu.dot_dimension_numbers<[1], [0], [0], [1], [0, 0, 1, 1], [], []>} : vector<4x4xbf16>, vector<4x64xbf16>, vector<4x64xf32> -> vector<4x64xf32>
    %181 = arith.addf %171, %180 : vector<4x64xf32>
    %182 = vector.broadcast %24 : vector<4x1xf32> to vector<4x64xf32>
    %183 = arith.addf %181, %182 : vector<4x64xf32>
    %c0_76 = arith.constant 0 : index
    %c0_77 = arith.constant 0 : index
    %c0_78 = arith.constant 0 : index
    %184 = vector.load %arg8[%c0_76, %c0_77, %c0_78] : memref<2x8x64xf32, #tpu.memory_space<vmem>>, vector<1x4x64xf32>
    %185 = vector.shape_cast %184 : vector<1x4x64xf32> to vector<4x64xf32>
    %186 = vector.shape_cast %183 : vector<4x64xf32> to vector<1x4x64xf32>
    tpu.vector_store %arg8[%c0_76, %c0_77, %c0_78], %186 {strides = array<i32>} : memref<2x8x64xf32, #tpu.memory_space<vmem>>, vector<1x4x64xf32>,
    %187 = vector.broadcast %25 : vector<4x1xf32> to vector<4x64xf32>
    %188 = arith.addf %41, %187 : vector<4x64xf32>
    %c0_79 = arith.constant 0 : index
    %c4_80 = arith.constant 4 : index
    %c0_81 = arith.constant 0 : index
    %189 = vector.load %arg8[%c0_79, %c4_80, %c0_81] : memref<2x8x64xf32, #tpu.memory_space<vmem>>, vector<1x4x64xf32>
    %190 = vector.shape_cast %189 : vector<1x4x64xf32> to vector<4x64xf32>
    %191 = vector.shape_cast %188 : vector<4x64xf32> to vector<1x4x64xf32>
    tpu.vector_store %arg8[%c0_79, %c4_80, %c0_81], %191 {strides = array<i32>} : memref<2x8x64xf32, #tpu.memory_space<vmem>>, vector<1x4x64xf32>,
    %c1_82 = arith.constant 1 : index
    %c0_83 = arith.constant 0 : index
    %c0_84 = arith.constant 0 : index
    %192 = vector.load %arg1[%c1_82, %c0_83, %c0_84] : memref<2x4x256xbf16, #tpu.memory_space<vmem>>, vector<1x4x256xbf16>
    %193 = vector.shape_cast %192 : vector<1x4x256xbf16> to vector<4x256xbf16>
    %194 = vector.extract_strided_slice %193 {offsets = [0, 0], sizes = [4, 64], strides = [1, 1]} : vector<4x256xbf16> to vector<4x64xbf16>
    %195 = arith.extf %194 : vector<4x64xbf16> to vector<4x64xf32>
    %196 = vector.extract_strided_slice %193 {offsets = [0, 64], sizes = [4, 64], strides = [1, 1]} : vector<4x256xbf16> to vector<4x64xbf16>
    %197 = arith.extf %196 : vector<4x64xbf16> to vector<4x64xf32>
    %198 = vector.extract_strided_slice %193 {offsets = [0, 128], sizes = [4, 64], strides = [1, 1]} : vector<4x256xbf16> to vector<4x64xbf16>
    %199 = arith.extf %198 : vector<4x64xbf16> to vector<4x64xf32>
    %200 = vector.extract_strided_slice %193 {offsets = [0, 192], sizes = [4, 64], strides = [1, 1]} : vector<4x256xbf16> to vector<4x64xbf16>
    %201 = arith.extf %200 : vector<4x64xbf16> to vector<4x64xf32>
    %202 = arith.maximumf %195, %197 : vector<4x64xf32>
    %203 = arith.maximumf %199, %201 : vector<4x64xf32>
    %204 = arith.maximumf %202, %203 : vector<4x64xf32>
    %205 = arith.truncf %204 : vector<4x64xf32> to vector<4x64xbf16>
    %cst_85 = arith.constant dense<0.000000e+00> : vector<4x64xf32>
    %206 = tpu.matmul %23, %205, %cst_85 {dimension_numbers = #tpu.dot_dimension_numbers<[1], [0], [0], [1], [0, 0, 1, 1], [], []>} : vector<4x4xbf16>, vector<4x64xbf16>, vector<4x64xf32> -> vector<4x64xf32>
    %cst_86 = arith.constant dense<0.000000e+00> : vector<4x256xf32>
    %207 = tpu.matmul %21, %193, %cst_86 {dimension_numbers = #tpu.dot_dimension_numbers<[1], [0], [0], [1], [0, 0, 1, 1], [], []>} : vector<4x4xbf16>, vector<4x256xbf16>, vector<4x256xf32> -> vector<4x256xf32>
    %208 = vector.broadcast %22 : vector<4x1xf32> to vector<4x256xf32>
    %209 = arith.addf %207, %208 : vector<4x256xf32>
    %210 = vector.extract_strided_slice %209 {offsets = [0, 0], sizes = [4, 64], strides = [1, 1]} : vector<4x256xf32> to vector<4x64xf32>
    %211 = tpu.concatenate %26, %210, %26 in 1 : vector<4x9xf32>, vector<4x64xf32>, vector<4x9xf32> -> vector<4x82xf32>
    %212 = vector.extract_strided_slice %209 {offsets = [0, 64], sizes = [4, 64], strides = [1, 1]} : vector<4x256xf32> to vector<4x64xf32>
    %213 = tpu.concatenate %26, %212, %26 in 1 : vector<4x9xf32>, vector<4x64xf32>, vector<4x9xf32> -> vector<4x82xf32>
    %214 = vector.extract_strided_slice %209 {offsets = [0, 128], sizes = [4, 64], strides = [1, 1]} : vector<4x256xf32> to vector<4x64xf32>
    %215 = tpu.concatenate %26, %214, %26 in 1 : vector<4x9xf32>, vector<4x64xf32>, vector<4x9xf32> -> vector<4x82xf32>
    %216 = vector.extract_strided_slice %209 {offsets = [0, 192], sizes = [4, 64], strides = [1, 1]} : vector<4x256xf32> to vector<4x64xf32>
    %217 = tpu.concatenate %26, %216, %26 in 1 : vector<4x9xf32>, vector<4x64xf32>, vector<4x9xf32> -> vector<4x82xf32>
    %cst_87 = arith.constant 0.000000e+00 : f32
    %218 = vector.broadcast %cst_87 : f32 to vector<4x64xf32>
    %219 = vector.extract_strided_slice %217 {offsets = [0, 0], sizes = [4, 64], strides = [1, 1]} : vector<4x82xf32> to vector<4x64xf32>
    %cst_88 = arith.constant 0.000000e+00 : f32
    %220 = vector.shape_cast %18 : vector<1x64xi1> to vector<1x64xi1>
    %221 = vector.broadcast %220 : vector<1x64xi1> to vector<4x64xi1>
    %222 = vector.broadcast %cst_88 : f32 to vector<4x64xf32>
    %223 = arith.select %221, %219, %222 : vector<4x64xi1>, vector<4x64xf32>
    %c0_89 = arith.constant 0 : index
    %c0_90 = arith.constant 0 : index
    %c0_91 = arith.constant 0 : index
    %224 = vector.load %arg4[%c0_89, %c0_90, %c0_91] : memref<16x4x4xbf16, #tpu.memory_space<vmem>>, vector<1x4x4xbf16>
    %225 = vector.shape_cast %224 : vector<1x4x4xbf16> to vector<4x4xbf16>
    %226 = arith.truncf %223 : vector<4x64xf32> to vector<4x64xbf16>
    %cst_92 = arith.constant dense<0.000000e+00> : vector<4x64xf32>
    %227 = tpu.matmul %225, %226, %cst_92 {dimension_numbers = #tpu.dot_dimension_numbers<[1], [0], [0], [1], [0, 0, 1, 1], [], []>} : vector<4x4xbf16>, vector<4x64xbf16>, vector<4x64xf32> -> vector<4x64xf32>
    %228 = arith.addf %218, %227 : vector<4x64xf32>
    %229 = vector.extract_strided_slice %215 {offsets = [0, 1], sizes = [4, 64], strides = [1, 1]} : vector<4x82xf32> to vector<4x64xf32>
    %c1_93 = arith.constant 1 : index
    %c0_94 = arith.constant 0 : index
    %c0_95 = arith.constant 0 : index
    %230 = vector.load %arg4[%c1_93, %c0_94, %c0_95] : memref<16x4x4xbf16, #tpu.memory_space<vmem>>, vector<1x4x4xbf16>
    %231 = vector.shape_cast %230 : vector<1x4x4xbf16> to vector<4x4xbf16>
    %232 = arith.truncf %229 : vector<4x64xf32> to vector<4x64xbf16>
    %cst_96 = arith.constant dense<0.000000e+00> : vector<4x64xf32>
    %233 = tpu.matmul %231, %232, %cst_96 {dimension_numbers = #tpu.dot_dimension_numbers<[1], [0], [0], [1], [0, 0, 1, 1], [], []>} : vector<4x4xbf16>, vector<4x64xbf16>, vector<4x64xf32> -> vector<4x64xf32>
    %234 = arith.addf %228, %233 : vector<4x64xf32>
    %235 = vector.extract_strided_slice %217 {offsets = [0, 1], sizes = [4, 64], strides = [1, 1]} : vector<4x82xf32> to vector<4x64xf32>
    %c2_97 = arith.constant 2 : index
    %c0_98 = arith.constant 0 : index
    %c0_99 = arith.constant 0 : index
    %236 = vector.load %arg4[%c2_97, %c0_98, %c0_99] : memref<16x4x4xbf16, #tpu.memory_space<vmem>>, vector<1x4x4xbf16>
    %237 = vector.shape_cast %236 : vector<1x4x4xbf16> to vector<4x4xbf16>
    %238 = arith.truncf %235 : vector<4x64xf32> to vector<4x64xbf16>
    %cst_100 = arith.constant dense<0.000000e+00> : vector<4x64xf32>
    %239 = tpu.matmul %237, %238, %cst_100 {dimension_numbers = #tpu.dot_dimension_numbers<[1], [0], [0], [1], [0, 0, 1, 1], [], []>} : vector<4x4xbf16>, vector<4x64xbf16>, vector<4x64xf32> -> vector<4x64xf32>
    %240 = arith.addf %234, %239 : vector<4x64xf32>
    %241 = vector.extract_strided_slice %215 {offsets = [0, 2], sizes = [4, 64], strides = [1, 1]} : vector<4x82xf32> to vector<4x64xf32>
    %cst_101 = arith.constant 0.000000e+00 : f32
    %242 = vector.shape_cast %20 : vector<1x64xi1> to vector<1x64xi1>
    %243 = vector.broadcast %242 : vector<1x64xi1> to vector<4x64xi1>
    %244 = vector.broadcast %cst_101 : f32 to vector<4x64xf32>
    %245 = arith.select %243, %241, %244 : vector<4x64xi1>, vector<4x64xf32>
    %c3_102 = arith.constant 3 : index
    %c0_103 = arith.constant 0 : index
    %c0_104 = arith.constant 0 : index
    %246 = vector.load %arg4[%c3_102, %c0_103, %c0_104] : memref<16x4x4xbf16, #tpu.memory_space<vmem>>, vector<1x4x4xbf16>
    %247 = vector.shape_cast %246 : vector<1x4x4xbf16> to vector<4x4xbf16>
    %248 = arith.truncf %245 : vector<4x64xf32> to vector<4x64xbf16>
    %cst_105 = arith.constant dense<0.000000e+00> : vector<4x64xf32>
    %249 = tpu.matmul %247, %248, %cst_105 {dimension_numbers = #tpu.dot_dimension_numbers<[1], [0], [0], [1], [0, 0, 1, 1], [], []>} : vector<4x4xbf16>, vector<4x64xbf16>, vector<4x64xf32> -> vector<4x64xf32>
    %250 = arith.addf %240, %249 : vector<4x64xf32>
    %251 = vector.extract_strided_slice %213 {offsets = [0, 8], sizes = [4, 64], strides = [1, 1]} : vector<4x82xf32> to vector<4x64xf32>
    %cst_106 = arith.constant 0.000000e+00 : f32
    %252 = vector.shape_cast %18 : vector<1x64xi1> to vector<1x64xi1>
    %253 = vector.broadcast %252 : vector<1x64xi1> to vector<4x64xi1>
    %254 = vector.broadcast %cst_106 : f32 to vector<4x64xf32>
    %255 = arith.select %253, %251, %254 : vector<4x64xi1>, vector<4x64xf32>
    %c4_107 = arith.constant 4 : index
    %c0_108 = arith.constant 0 : index
    %c0_109 = arith.constant 0 : index
    %256 = vector.load %arg4[%c4_107, %c0_108, %c0_109] : memref<16x4x4xbf16, #tpu.memory_space<vmem>>, vector<1x4x4xbf16>
    %257 = vector.shape_cast %256 : vector<1x4x4xbf16> to vector<4x4xbf16>
    %258 = arith.truncf %255 : vector<4x64xf32> to vector<4x64xbf16>
    %cst_110 = arith.constant dense<0.000000e+00> : vector<4x64xf32>
    %259 = tpu.matmul %257, %258, %cst_110 {dimension_numbers = #tpu.dot_dimension_numbers<[1], [0], [0], [1], [0, 0, 1, 1], [], []>} : vector<4x4xbf16>, vector<4x64xbf16>, vector<4x64xf32> -> vector<4x64xf32>
    %260 = arith.addf %250, %259 : vector<4x64xf32>
    %261 = vector.extract_strided_slice %211 {offsets = [0, 9], sizes = [4, 64], strides = [1, 1]} : vector<4x82xf32> to vector<4x64xf32>
    %c5_111 = arith.constant 5 : index
    %c0_112 = arith.constant 0 : index
    %c0_113 = arith.constant 0 : index
    %262 = vector.load %arg4[%c5_111, %c0_112, %c0_113] : memref<16x4x4xbf16, #tpu.memory_space<vmem>>, vector<1x4x4xbf16>
    %263 = vector.shape_cast %262 : vector<1x4x4xbf16> to vector<4x4xbf16>
    %264 = arith.truncf %261 : vector<4x64xf32> to vector<4x64xbf16>
    %cst_114 = arith.constant dense<0.000000e+00> : vector<4x64xf32>
    %265 = tpu.matmul %263, %264, %cst_114 {dimension_numbers = #tpu.dot_dimension_numbers<[1], [0], [0], [1], [0, 0, 1, 1], [], []>} : vector<4x4xbf16>, vector<4x64xbf16>, vector<4x64xf32> -> vector<4x64xf32>
    %266 = arith.addf %260, %265 : vector<4x64xf32>
    %267 = vector.extract_strided_slice %213 {offsets = [0, 9], sizes = [4, 64], strides = [1, 1]} : vector<4x82xf32> to vector<4x64xf32>
    %c6_115 = arith.constant 6 : index
    %c0_116 = arith.constant 0 : index
    %c0_117 = arith.constant 0 : index
    %268 = vector.load %arg4[%c6_115, %c0_116, %c0_117] : memref<16x4x4xbf16, #tpu.memory_space<vmem>>, vector<1x4x4xbf16>
    %269 = vector.shape_cast %268 : vector<1x4x4xbf16> to vector<4x4xbf16>
    %270 = arith.truncf %267 : vector<4x64xf32> to vector<4x64xbf16>
    %cst_118 = arith.constant dense<0.000000e+00> : vector<4x64xf32>
    %271 = tpu.matmul %269, %270, %cst_118 {dimension_numbers = #tpu.dot_dimension_numbers<[1], [0], [0], [1], [0, 0, 1, 1], [], []>} : vector<4x4xbf16>, vector<4x64xbf16>, vector<4x64xf32> -> vector<4x64xf32>
    %272 = arith.addf %266, %271 : vector<4x64xf32>
    %273 = vector.extract_strided_slice %211 {offsets = [0, 10], sizes = [4, 64], strides = [1, 1]} : vector<4x82xf32> to vector<4x64xf32>
    %cst_119 = arith.constant 0.000000e+00 : f32
    %274 = vector.shape_cast %20 : vector<1x64xi1> to vector<1x64xi1>
    %275 = vector.broadcast %274 : vector<1x64xi1> to vector<4x64xi1>
    %276 = vector.broadcast %cst_119 : f32 to vector<4x64xf32>
    %277 = arith.select %275, %273, %276 : vector<4x64xi1>, vector<4x64xf32>
    %c7_120 = arith.constant 7 : index
    %c0_121 = arith.constant 0 : index
    %c0_122 = arith.constant 0 : index
    %278 = vector.load %arg4[%c7_120, %c0_121, %c0_122] : memref<16x4x4xbf16, #tpu.memory_space<vmem>>, vector<1x4x4xbf16>
    %279 = vector.shape_cast %278 : vector<1x4x4xbf16> to vector<4x4xbf16>
    %280 = arith.truncf %277 : vector<4x64xf32> to vector<4x64xbf16>
    %cst_123 = arith.constant dense<0.000000e+00> : vector<4x64xf32>
    %281 = tpu.matmul %279, %280, %cst_123 {dimension_numbers = #tpu.dot_dimension_numbers<[1], [0], [0], [1], [0, 0, 1, 1], [], []>} : vector<4x4xbf16>, vector<4x64xbf16>, vector<4x64xf32> -> vector<4x64xf32>
    %282 = arith.addf %272, %281 : vector<4x64xf32>
    %283 = vector.extract_strided_slice %217 {offsets = [0, 8], sizes = [4, 64], strides = [1, 1]} : vector<4x82xf32> to vector<4x64xf32>
    %cst_124 = arith.constant 0.000000e+00 : f32
    %284 = vector.shape_cast %18 : vector<1x64xi1> to vector<1x64xi1>
    %285 = vector.broadcast %284 : vector<1x64xi1> to vector<4x64xi1>
    %286 = vector.broadcast %cst_124 : f32 to vector<4x64xf32>
    %287 = arith.select %285, %283, %286 : vector<4x64xi1>, vector<4x64xf32>
    %c8_125 = arith.constant 8 : index
    %c0_126 = arith.constant 0 : index
    %c0_127 = arith.constant 0 : index
    %288 = vector.load %arg4[%c8_125, %c0_126, %c0_127] : memref<16x4x4xbf16, #tpu.memory_space<vmem>>, vector<1x4x4xbf16>
    %289 = vector.shape_cast %288 : vector<1x4x4xbf16> to vector<4x4xbf16>
    %290 = arith.truncf %287 : vector<4x64xf32> to vector<4x64xbf16>
    %cst_128 = arith.constant dense<0.000000e+00> : vector<4x64xf32>
    %291 = tpu.matmul %289, %290, %cst_128 {dimension_numbers = #tpu.dot_dimension_numbers<[1], [0], [0], [1], [0, 0, 1, 1], [], []>} : vector<4x4xbf16>, vector<4x64xbf16>, vector<4x64xf32> -> vector<4x64xf32>
    %292 = arith.addf %282, %291 : vector<4x64xf32>
    %293 = vector.extract_strided_slice %215 {offsets = [0, 9], sizes = [4, 64], strides = [1, 1]} : vector<4x82xf32> to vector<4x64xf32>
    %c9_129 = arith.constant 9 : index
    %c0_130 = arith.constant 0 : index
    %c0_131 = arith.constant 0 : index
    %294 = vector.load %arg4[%c9_129, %c0_130, %c0_131] : memref<16x4x4xbf16, #tpu.memory_space<vmem>>, vector<1x4x4xbf16>
    %295 = vector.shape_cast %294 : vector<1x4x4xbf16> to vector<4x4xbf16>
    %296 = arith.truncf %293 : vector<4x64xf32> to vector<4x64xbf16>
    %cst_132 = arith.constant dense<0.000000e+00> : vector<4x64xf32>
    %297 = tpu.matmul %295, %296, %cst_132 {dimension_numbers = #tpu.dot_dimension_numbers<[1], [0], [0], [1], [0, 0, 1, 1], [], []>} : vector<4x4xbf16>, vector<4x64xbf16>, vector<4x64xf32> -> vector<4x64xf32>
    %298 = arith.addf %292, %297 : vector<4x64xf32>
    %299 = vector.extract_strided_slice %217 {offsets = [0, 9], sizes = [4, 64], strides = [1, 1]} : vector<4x82xf32> to vector<4x64xf32>
    %c10_133 = arith.constant 10 : index
    %c0_134 = arith.constant 0 : index
    %c0_135 = arith.constant 0 : index
    %300 = vector.load %arg4[%c10_133, %c0_134, %c0_135] : memref<16x4x4xbf16, #tpu.memory_space<vmem>>, vector<1x4x4xbf16>
    %301 = vector.shape_cast %300 : vector<1x4x4xbf16> to vector<4x4xbf16>
    %302 = arith.truncf %299 : vector<4x64xf32> to vector<4x64xbf16>
    %cst_136 = arith.constant dense<0.000000e+00> : vector<4x64xf32>
    %303 = tpu.matmul %301, %302, %cst_136 {dimension_numbers = #tpu.dot_dimension_numbers<[1], [0], [0], [1], [0, 0, 1, 1], [], []>} : vector<4x4xbf16>, vector<4x64xbf16>, vector<4x64xf32> -> vector<4x64xf32>
    %304 = arith.addf %298, %303 : vector<4x64xf32>
    %305 = vector.extract_strided_slice %215 {offsets = [0, 10], sizes = [4, 64], strides = [1, 1]} : vector<4x82xf32> to vector<4x64xf32>
    %cst_137 = arith.constant 0.000000e+00 : f32
    %306 = vector.shape_cast %20 : vector<1x64xi1> to vector<1x64xi1>
    %307 = vector.broadcast %306 : vector<1x64xi1> to vector<4x64xi1>
    %308 = vector.broadcast %cst_137 : f32 to vector<4x64xf32>
    %309 = arith.select %307, %305, %308 : vector<4x64xi1>, vector<4x64xf32>
    %c11_138 = arith.constant 11 : index
    %c0_139 = arith.constant 0 : index
    %c0_140 = arith.constant 0 : index
    %310 = vector.load %arg4[%c11_138, %c0_139, %c0_140] : memref<16x4x4xbf16, #tpu.memory_space<vmem>>, vector<1x4x4xbf16>
    %311 = vector.shape_cast %310 : vector<1x4x4xbf16> to vector<4x4xbf16>
    %312 = arith.truncf %309 : vector<4x64xf32> to vector<4x64xbf16>
    %cst_141 = arith.constant dense<0.000000e+00> : vector<4x64xf32>
    %313 = tpu.matmul %311, %312, %cst_141 {dimension_numbers = #tpu.dot_dimension_numbers<[1], [0], [0], [1], [0, 0, 1, 1], [], []>} : vector<4x4xbf16>, vector<4x64xbf16>, vector<4x64xf32> -> vector<4x64xf32>
    %314 = arith.addf %304, %313 : vector<4x64xf32>
    %315 = vector.extract_strided_slice %213 {offsets = [0, 16], sizes = [4, 64], strides = [1, 1]} : vector<4x82xf32> to vector<4x64xf32>
    %cst_142 = arith.constant 0.000000e+00 : f32
    %316 = vector.shape_cast %18 : vector<1x64xi1> to vector<1x64xi1>
    %317 = vector.broadcast %316 : vector<1x64xi1> to vector<4x64xi1>
    %318 = vector.broadcast %cst_142 : f32 to vector<4x64xf32>
    %319 = arith.select %317, %315, %318 : vector<4x64xi1>, vector<4x64xf32>
    %c12_143 = arith.constant 12 : index
    %c0_144 = arith.constant 0 : index
    %c0_145 = arith.constant 0 : index
    %320 = vector.load %arg4[%c12_143, %c0_144, %c0_145] : memref<16x4x4xbf16, #tpu.memory_space<vmem>>, vector<1x4x4xbf16>
    %321 = vector.shape_cast %320 : vector<1x4x4xbf16> to vector<4x4xbf16>
    %322 = arith.truncf %319 : vector<4x64xf32> to vector<4x64xbf16>
    %cst_146 = arith.constant dense<0.000000e+00> : vector<4x64xf32>
    %323 = tpu.matmul %321, %322, %cst_146 {dimension_numbers = #tpu.dot_dimension_numbers<[1], [0], [0], [1], [0, 0, 1, 1], [], []>} : vector<4x4xbf16>, vector<4x64xbf16>, vector<4x64xf32> -> vector<4x64xf32>
    %324 = arith.addf %314, %323 : vector<4x64xf32>
    %325 = vector.extract_strided_slice %211 {offsets = [0, 17], sizes = [4, 64], strides = [1, 1]} : vector<4x82xf32> to vector<4x64xf32>
    %c13_147 = arith.constant 13 : index
    %c0_148 = arith.constant 0 : index
    %c0_149 = arith.constant 0 : index
    %326 = vector.load %arg4[%c13_147, %c0_148, %c0_149] : memref<16x4x4xbf16, #tpu.memory_space<vmem>>, vector<1x4x4xbf16>
    %327 = vector.shape_cast %326 : vector<1x4x4xbf16> to vector<4x4xbf16>
    %328 = arith.truncf %325 : vector<4x64xf32> to vector<4x64xbf16>
    %cst_150 = arith.constant dense<0.000000e+00> : vector<4x64xf32>
    %329 = tpu.matmul %327, %328, %cst_150 {dimension_numbers = #tpu.dot_dimension_numbers<[1], [0], [0], [1], [0, 0, 1, 1], [], []>} : vector<4x4xbf16>, vector<4x64xbf16>, vector<4x64xf32> -> vector<4x64xf32>
    %330 = arith.addf %324, %329 : vector<4x64xf32>
    %331 = vector.extract_strided_slice %213 {offsets = [0, 17], sizes = [4, 64], strides = [1, 1]} : vector<4x82xf32> to vector<4x64xf32>
    %c14_151 = arith.constant 14 : index
    %c0_152 = arith.constant 0 : index
    %c0_153 = arith.constant 0 : index
    %332 = vector.load %arg4[%c14_151, %c0_152, %c0_153] : memref<16x4x4xbf16, #tpu.memory_space<vmem>>, vector<1x4x4xbf16>
    %333 = vector.shape_cast %332 : vector<1x4x4xbf16> to vector<4x4xbf16>
    %334 = arith.truncf %331 : vector<4x64xf32> to vector<4x64xbf16>
    %cst_154 = arith.constant dense<0.000000e+00> : vector<4x64xf32>
    %335 = tpu.matmul %333, %334, %cst_154 {dimension_numbers = #tpu.dot_dimension_numbers<[1], [0], [0], [1], [0, 0, 1, 1], [], []>} : vector<4x4xbf16>, vector<4x64xbf16>, vector<4x64xf32> -> vector<4x64xf32>
    %336 = arith.addf %330, %335 : vector<4x64xf32>
    %337 = vector.extract_strided_slice %211 {offsets = [0, 18], sizes = [4, 64], strides = [1, 1]} : vector<4x82xf32> to vector<4x64xf32>
    %cst_155 = arith.constant 0.000000e+00 : f32
    %338 = vector.shape_cast %20 : vector<1x64xi1> to vector<1x64xi1>
    %339 = vector.broadcast %338 : vector<1x64xi1> to vector<4x64xi1>
    %340 = vector.broadcast %cst_155 : f32 to vector<4x64xf32>
    %341 = arith.select %339, %337, %340 : vector<4x64xi1>, vector<4x64xf32>
    %c15_156 = arith.constant 15 : index
    %c0_157 = arith.constant 0 : index
    %c0_158 = arith.constant 0 : index
    %342 = vector.load %arg4[%c15_156, %c0_157, %c0_158] : memref<16x4x4xbf16, #tpu.memory_space<vmem>>, vector<1x4x4xbf16>
    %343 = vector.shape_cast %342 : vector<1x4x4xbf16> to vector<4x4xbf16>
    %344 = arith.truncf %341 : vector<4x64xf32> to vector<4x64xbf16>
    %cst_159 = arith.constant dense<0.000000e+00> : vector<4x64xf32>
    %345 = tpu.matmul %343, %344, %cst_159 {dimension_numbers = #tpu.dot_dimension_numbers<[1], [0], [0], [1], [0, 0, 1, 1], [], []>} : vector<4x4xbf16>, vector<4x64xbf16>, vector<4x64xf32> -> vector<4x64xf32>
    %346 = arith.addf %336, %345 : vector<4x64xf32>
    %347 = vector.broadcast %24 : vector<4x1xf32> to vector<4x64xf32>
    %348 = arith.addf %346, %347 : vector<4x64xf32>
    %c1_160 = arith.constant 1 : index
    %c0_161 = arith.constant 0 : index
    %c0_162 = arith.constant 0 : index
    %349 = vector.load %arg8[%c1_160, %c0_161, %c0_162] : memref<2x8x64xf32, #tpu.memory_space<vmem>>, vector<1x4x64xf32>
    %350 = vector.shape_cast %349 : vector<1x4x64xf32> to vector<4x64xf32>
    %351 = vector.shape_cast %348 : vector<4x64xf32> to vector<1x4x64xf32>
    tpu.vector_store %arg8[%c1_160, %c0_161, %c0_162], %351 {strides = array<i32>} : memref<2x8x64xf32, #tpu.memory_space<vmem>>, vector<1x4x64xf32>,
    %352 = vector.broadcast %25 : vector<4x1xf32> to vector<4x64xf32>
    %353 = arith.addf %206, %352 : vector<4x64xf32>
    %c1_163 = arith.constant 1 : index
    %c4_164 = arith.constant 4 : index
    %c0_165 = arith.constant 0 : index
    %354 = vector.load %arg8[%c1_163, %c4_164, %c0_165] : memref<2x8x64xf32, #tpu.memory_space<vmem>>, vector<1x4x64xf32>
    %355 = vector.shape_cast %354 : vector<1x4x64xf32> to vector<4x64xf32>
    %356 = vector.shape_cast %353 : vector<4x64xf32> to vector<1x4x64xf32>
    tpu.vector_store %arg8[%c1_163, %c4_164, %c0_165], %356 {strides = array<i32>} : memref<2x8x64xf32, #tpu.memory_space<vmem>>, vector<1x4x64xf32>,
    return
  }
  func.func @transform_0(%arg0: i32) -> (i32, i32, i32) {
    %c0_i32 = arith.constant 0 : i32
    %c0_i32_0 = arith.constant 0 : i32
    %c0_i32_1 = arith.constant 0 : i32
    return %arg0, %c0_i32, %c0_i32_0 : i32, i32, i32
  }
  func.func @transform_1(%arg0: i32) -> (i32, i32) {
    %c0_i32 = arith.constant 0 : i32
    %c0_i32_0 = arith.constant 0 : i32
    %c0_i32_1 = arith.constant 0 : i32
    return %c0_i32, %c0_i32_0 : i32, i32
  }
  func.func @transform_2(%arg0: i32) -> (i32, i32) {
    %c0_i32 = arith.constant 0 : i32
    %c0_i32_0 = arith.constant 0 : i32
    %c0_i32_1 = arith.constant 0 : i32
    return %c0_i32, %c0_i32_0 : i32, i32
  }
  func.func @transform_3(%arg0: i32) -> (i32, i32, i32) {
    %c0_i32 = arith.constant 0 : i32
    %c0_i32_0 = arith.constant 0 : i32
    %c0_i32_1 = arith.constant 0 : i32
    %c0_i32_2 = arith.constant 0 : i32
    return %c0_i32, %c0_i32_0, %c0_i32_1 : i32, i32, i32
  }
  func.func @transform_4(%arg0: i32) -> (i32, i32) {
    %c0_i32 = arith.constant 0 : i32
    %c0_i32_0 = arith.constant 0 : i32
    %c0_i32_1 = arith.constant 0 : i32
    return %c0_i32, %c0_i32_0 : i32, i32
  }
  func.func @transform_5(%arg0: i32) -> (i32, i32) {
    %c0_i32 = arith.constant 0 : i32
    %c0_i32_0 = arith.constant 0 : i32
    %c0_i32_1 = arith.constant 0 : i32
    return %c0_i32, %c0_i32_0 : i32, i32
  }
  func.func @transform_6(%arg0: i32) -> (i32, i32) {
    %c0_i32 = arith.constant 0 : i32
    %c0_i32_0 = arith.constant 0 : i32
    %c0_i32_1 = arith.constant 0 : i32
    return %c0_i32, %c0_i32_0 : i32, i32
  }
  func.func @transform_7(%arg0: i32) -> (i32, i32, i32) {
    %c0_i32 = arith.constant 0 : i32
    %c0_i32_0 = arith.constant 0 : i32
    %c0_i32_1 = arith.constant 0 : i32
    return %arg0, %c0_i32, %c0_i32_0 : i32, i32, i32
  }
}

</mosaic_0001>

<bundles_post_ra>
// kernel: downsample_forward.1
= control target key start
LH: loop header
LB: loop body
LE: loop exit
PB: predicated region body
PF: predicated region fallthrough
CT: control target
= control target key end

     0   :  { %v27_v0 = vlaneseq  ;;  %v2405_v1 = vmov 1983009808   ;;  %v2406_v3 = vmov 0   ;;  %vm84_vm0 = vcmask 1041408   ;;  %s2409_s29 = smov 73   ;;  %s2411_s30 = smov 126   ;;  %s2942_s2 = inlined_call_operand.vmem [shape: f32[4,1], index: 2, kind: input, shape index: {}]   ;;  %s2943_s0 = inlined_call_operand.vmem [shape: bf16[2,4,256], index: 0, kind: input, shape index: {}]   ;;  %s2944_s1 = inlined_call_operand.vmem [shape: bf16[4,4], index: 1, kind: input, shape index: {}]   ;;  %s2945_s3 = inlined_call_operand.vmem [shape: bf16[16,4,4], index: 3, kind: input, shape index: {}]   ;;  %s2946_s4 = inlined_call_operand.vmem [shape: bf16[4,4], index: 4, kind: input, shape index: {}]   ;;  %s2947_s5 = inlined_call_operand.vmem [shape: f32[4,1], index: 5, kind: input, shape index: {}]   ;;  %s2948_s6 = inlined_call_operand.vmem [shape: f32[4,1], index: 6, kind: input, shape index: {}]   ;;  %s2949_s7 = inlined_call_operand.vmem [shape: f32[2,8,64], index: 7, kind: output, shape index: {}]  }
   0x1   :  { %v73_v2 = vunpack.c.l.s4 %v2405_v1  ;;  %123 = vmatprep.mubr.bf16.mxu0 %v2406_v3  ;;  %2403 = vset.pattern.permute.xlu0 %v2406_v3  ;;  %v44_v5 = vld [vmem:[%s2942_s2] sm:$0xf]  ;;  %vm80_vm1 = vcmask 31744   ;;  %v2407_v14 = vmov 0.0   ;;  %vm2410_vm2 = vmmov 0   ;;  %s2412_s8 = smov 119  }
   0x2   :  { %v76_v4 = vshrl.u32 %v27_v0, 7  ;;  %2404 = vset.pattern.permute.xlu1 %v2406_v3  ;;  %69 = vperm.xlu0 %2403, %v44_v5   ;;  %v2469_v7 = vld [vmem:[%s2943_s0] sm:$0xf]  ;;  %v28_v21 = vand.u32 127, %v27_v0  ;;  %vm136_vm3 = vcmask 72704   ;;  %vm138_vm4 = vcmask 596992  }
   0x3   :  { %v74_v6 = vunpack.c.0.s8 %v73_v2  ;;  %v2480_v12 = vld [vmem:[%s2944_s1] sm:$0x3]  ;;  %2184 = vmatprep.subr.bf16.mxu1 %v2407_v14  ;;  %s2408_s1 = smov 9   ;;  %2186 = vmatprep.mubr.msk.bf16.mxu1 %vm2410_vm2, %v2407_v14  ;;  %s2413_s9 = smov 118   ;;  %v2052_v48 = vld [vmem:[%s2945_s3 + $0x6] sm:$0x3] }
   0x4   :  { %v33_v22 = vand.u32 7, %v28_v21  ;;  %v159_v38 = vld [vmem:[%s2945_s3] sm:$0x3]  ;;  %s2414_s12 = smov 111   ;;  %s2415_s13 = smov 110   ;;  %vm1012_vm7 = vcmask 519168  }
   0x5   :  { %v2471_v8 = vsub.s32 %v74_v6, %v76_v4  ;;  %s2416_s14 = smov 127   ;;  %v2056_v56 = vld [vmem:[%s2945_s3 + $0xa] sm:$0x3]  ;;  %s2417_s19 = smov 120   ;;  %v2047_v0 = vld [vmem:[%s2945_s3 + $0x2] sm:$0x3] }
   0x6   :  { %vm2501_vm5 = vcmp.ge.s32.totalorder %v33_v22, 1  ;;  %vm2532_vm6 = vcmp.le.s32.totalorder %v33_v22, 6  ;;  %v2060_v2 = vld [vmem:[%s2945_s3 + $0xe] sm:$0x3]  ;;  %v2050_v6 = vld [vmem:[%s2945_s3 + $0x4] sm:$0x3] }
   0x7   :  { %v78_v9 = vrot.slane %v2469_v7, %v2471_v8  ;;  %v2072_v21 = vld [vmem:[%s2945_s3 + $0x1a] sm:$0x3]  ;;  %s2418_s27 = smov 64   ;;  %s2419_s2 = smov 112   ;;  %v2103_v30 = vld [vmem:[%s2945_s3 + $0x16] sm:$0x3] }
   0x8   :  { %v2107_v40 = vld [vmem:[%s2945_s3 + $0x1a] sm:$0x3] }
   0x9   :  { %v79_v10 = vcombine.high %v78_v9, %v78_v9  ;;  %v86_v11 = vsel %vm84_vm0, %v78_v9, 0 }
   0xb   :  { %2045 = vmatprep.subr.msk.bf16.mxu0 %vm84_vm0, %v79_v10  ;;  %v2064_v10 = vld [vmem:[%s2945_s3 + $0x12] sm:$0x3] }
   0xc   :  { %92 = vmatpush1.bf16.msra.mxu0 %v86_v11 }
   0xd   :  { %2190 = vmatprep.subr.bf16.mxu0 %v2407_v14 }
   0xf   :  { %2046 = vmatmul.mubr.msk.bf16.vlgmr.msra.gmra.mrb[0].mxu0 %vm80_vm1, %v2480_v12 }
  0x10   :  { %2192 = vmatprep.mubr.msk.bf16.mxu0 %vm2410_vm2, %v2407_v14 }
  0x81   :  { %v2484_v13 = vpop.permute.xlu0 %69 }
  0xe2   :  { %v125_v15 = vpop.f32.mrb[0].mxu0 }
  0xe3   :  { %v126_v16 = vadd.f32 %v125_v15, %v2484_v13  ;;  %v127_v17 = vpop.f32.mrb[1].mxu0  ;;  %v2068_v15 = vld [vmem:[%s2945_s3 + $0x16] sm:$0x3] }
  0xe4   :  { %v128_v18 = vadd.f32 %v127_v17, %v2484_v13  ;;  %v129_v19 = vpop.f32.mrb[2].mxu0 }
  0xe5   :  { %v130_v20 = vpop.f32.mrb[3].mxu0  ;;  %133 = vrot.lane.b32.xlu1 %v126_v16, %s2408_s1 }
  0xe6   :  { %146 = vrot.lane.b32.xlu0 %v128_v18, %s2408_s1 }
  0xe9   :  { %151 = vrot.lane.b32.xlu1 %v128_v18, %s2409_s29 }
 0x157   :  { %v134_v23 = vpop.permute.xlu1 %133 }
 0x158   :  { %v137_v24 = vsel %vm136_vm3, 0.0, %v134_v23  ;;  %v147_v25 = vpop.permute.xlu0 %146 }
 0x159   :  { %v139_v26 = vsel %vm138_vm4, %v137_v24, 0.0  ;;  %v149_v27 = vsel %vm136_vm3, 0.0, %v147_v25 }
 0x15a   :  { %v426_v28 = vpack.c.bf16 %v139_v26, %v139_v26  ;;  %v150_v29 = vsel %vm138_vm4, %v149_v27, 0.0 }
 0x15b   :  { %315 = vrot.lane.b32.xlu0 %v150_v29, %s2411_s30  ;;  %v152_v31 = vpop.permute.xlu1 %151  ;;  %v163_v34 = vpack.c.bf16 %v150_v29, %v150_v29 }
 0x15c   :  { %v154_v32 = vsel %vm136_vm3, 0.0, %v152_v31  ;;  %428 = vrot.lane.b32.xlu1 %v426_v28, %s2412_s8 }
 0x15d   :  { %v2509_v33 = vsel %vm138_vm4, %v154_v32, 0.0 }
 0x15e   :  { %v158_v35 = vsel %vm2501_vm5, %v2509_v33, 0.0  ;;  %v261_v39 = vpack.c.bf16 %v2509_v33, %v2509_v33 }
 0x15f   :  { %v160_v36 = vpack.c.bf16 %v158_v35, %v158_v35  ;;  %531 = vrot.lane.b32.xlu0 %v139_v26, %s2413_s9 }
 0x160   :  { %642 = vrot.lane.b32.xlu1 %v163_v34, %s2412_s8 }
 0x161   :  { %v217_v37 = vsel %vm84_vm0, %v160_v36, 0 }
 0x162   :  { %2191 = vmatpush3.bf16.msra.mxu0 %v217_v37 }
 0x163   :  { %742 = vrot.lane.b32.xlu0 %v150_v29, %s2413_s9  ;;  %2202 = vmatprep.subr.bf16.mxu0 %v2407_v14 }
 0x164   :  { %852 = vrot.lane.b32.xlu1 %v426_v28, %s2414_s12 }
 0x165   :  { %2193 = vmatmul.mubr.msk.bf16.vlgmr.msra.gmra.mrb[4].mxu0 %vm80_vm1, %v159_v38  ;;  %v2058_v38 = vld [vmem:[%s2945_s3 + $0xc] sm:$0x3] }
 0x166   :  { %2204 = vmatprep.mubr.msk.bf16.mxu0 %vm2410_vm2, %v2407_v14 }
 0x167   :  { %952 = vrot.lane.b32.xlu0 %v139_v26, %s2415_s13 }
 0x168   :  { %140 = vrot.lane.b32.xlu1 %v126_v16, %s2409_s29  ;;  %v2613_v16 = vld [vmem:[%s2943_s0 + $0x4] sm:$0xf] }
 0x169   :  { %v1092_v19 = vrot.slane %v2613_v16, %v2471_v8  ;;  %v2076_v8 = vld [vmem:[%s2945_s3 + $0x1e] sm:$0x3] }
 0x16b   :  { %165 = vrot.lane.b32.xlu0 %v163_v34, %s2416_s14  ;;  %v1093_v22 = vcombine.high %v1092_v19, %v1092_v19  ;;  %v1095_v24 = vsel %vm84_vm0, %v1092_v19, 0 }
 0x16c   :  { %263 = vrot.lane.b32.xlu1 %v261_v39, %s2416_s14 }
 0x1cd   :  { %v316_v41 = vpop.permute.xlu0 %315 }
 0x1ce   :  { %v318_v42 = vsel %vm2532_vm6, %v316_v41, 0.0  ;;  %v429_v43 = vpop.permute.xlu1 %428 }
 0x1cf   :  { %v321_v44 = vpack.c.bf16 %v318_v42, %v318_v42  ;;  %v434_v49 = vsel %vm84_vm0, %v429_v43, 0  ;;  %v2062_v42 = vld [vmem:[%s2945_s3 + $0x10] sm:$0x3] }
 0x1d1   :  { %v326_v45 = vsel %vm84_vm0, %v321_v44, 0  ;;  %v532_v46 = vpop.permute.xlu0 %531  ;;  %v2066_v44 = vld [vmem:[%s2945_s3 + $0x14] sm:$0x3] }
 0x1d2   :  { %2203 = vmatpush3.bf16.msra.mxu0 %v326_v45  ;;  %v643_v47 = vpop.permute.xlu1 %642  ;;  %v534_v51 = vsel %vm2532_vm6, %v532_v46, 0.0  ;;  %v49_v45 = vunpack.c.l.bf16 %v2469_v7 }
 0x1d3   :  { %2214 = vmatprep.subr.bf16.mxu0 %v2407_v14  ;;  %v537_v53 = vpack.c.bf16 %v534_v51, %v534_v51  ;;  %v648_v4 = vsel %vm84_vm0, %v643_v47, 0 }
 0x1d5   :  { %v743_v50 = vpop.permute.xlu0 %742  ;;  %2205 = vmatmul.mubr.msk.bf16.vlgmr.msra.gmra.mrb[8].mxu0 %vm80_vm1, %v2052_v48  ;;  %v542_v59 = vsel %vm84_vm0, %v537_v53, 0 }
 0x1d6   :  { %2215 = vmatpush3.bf16.msra.mxu0 %v434_v49  ;;  %v853_v52 = vpop.permute.xlu1 %852  ;;  %2216 = vmatprep.mubr.msk.bf16.mxu0 %vm2410_vm2, %v2407_v14  ;;  %v745_v5 = vsel %vm2532_vm6, %v743_v50, 0.0 }
 0x1d7   :  { %2226 = vmatprep.subr.bf16.mxu0 %v2407_v14  ;;  %v748_v9 = vpack.c.bf16 %v745_v5, %v745_v5  ;;  %v858_v17 = vsel %vm84_vm0, %v853_v52, 0 }
 0x1d9   :  { %v953_v54 = vpop.permute.xlu0 %952  ;;  %v753_v11 = vsel %vm84_vm0, %v748_v9, 0 }
 0x1da   :  { %v141_v55 = vpop.permute.xlu1 %140  ;;  %v955_v18 = vsel %vm2532_vm6, %v953_v54, 0.0 }
 0x1db   :  { %v143_v57 = vsel %vm136_vm3, 0.0, %v141_v55  ;;  %v958_v20 = vpack.c.bf16 %v955_v18, %v955_v18 }
 0x1dc   :  { %v2555_v58 = vsel %vm138_vm4, %v143_v57, 0.0 }
 0x1dd   :  { %v166_v60 = vpop.permute.xlu0 %165  ;;  %2217 = vmatmul.mubr.msk.bf16.vlgmr.msra.gmra.mrb[12].mxu0 %vm80_vm1, %v2056_v56  ;;  %370 = vrot.lane.b32.xlu1 %v2555_v58, %s2417_s19  ;;  %v2566_v62 = vpack.c.bf16 %v2555_v58, %v2555_v58  ;;  %v963_v23 = vsel %vm84_vm0, %v958_v20, 0 }
 0x1de   :  { %2227 = vmatpush3.bf16.msra.mxu0 %v542_v59  ;;  %v171_v61 = vsel %vm84_vm0, %v166_v60, 0  ;;  %2228 = vmatprep.mubr.msk.bf16.mxu0 %vm2410_vm2, %v2407_v14  ;;  %v264_v63 = vpop.permute.xlu1 %263 }
 0x1df   :  { %2185 = vmatpush3.bf16.msra.mxu1 %v171_v61  ;;  %2238 = vmatprep.subr.bf16.mxu0 %v2407_v14  ;;  %v269_v1 = vsel %vm84_vm0, %v264_v63, 0 }
 0x1e0   :  { %2196 = vmatprep.subr.bf16.mxu1 %v2407_v14 }
 0x1e1   :  { %481 = vrot.lane.b32.xlu1 %v2566_v62, %s2412_s8 }
 0x1e2   :  { %2187 = vmatmul.mubr.msk.bf16.vlgmr.msra.gmra.mrb[0].mxu1 %vm80_vm1, %v2047_v0 }
 0x1e3   :  { %2197 = vmatpush3.bf16.msra.mxu1 %v269_v1  ;;  %2198 = vmatprep.mubr.msk.bf16.mxu1 %vm2410_vm2, %v2407_v14 }
 0x1e4   :  { %2208 = vmatprep.subr.bf16.mxu1 %v2407_v14 }
 0x1e5   :  { %2229 = vmatmul.mubr.msk.bf16.vlgmr.msra.gmra.mrb[16].mxu0 %vm80_vm1, %v2060_v2  ;;  %586 = vrot.lane.b32.xlu1 %v2509_v33, %s2417_s19 }
 0x1e6   :  { %2239 = vmatpush3.bf16.msra.mxu0 %v648_v4  ;;  %2240 = vmatprep.mubr.msk.bf16.mxu0 %vm2410_vm2, %v2407_v14 }
 0x1e7   :  { %2250 = vmatprep.subr.bf16.mxu0 %v2407_v14 }
 0x1e9   :  { %693 = vrot.lane.b32.xlu1 %v261_v39, %s2412_s8 }
 0x1ea   :  { %2199 = vmatmul.mubr.msk.bf16.vlgmr.msra.gmra.mrb[4].mxu1 %vm80_vm1, %v2050_v6 }
 0x1eb   :  { %2210 = vmatprep.mubr.msk.bf16.mxu1 %vm2410_vm2, %v2407_v14 }
 0x1ed   :  { %2241 = vmatmul.mubr.msk.bf16.vlgmr.msra.gmra.mrb[20].mxu0 %vm80_vm1, %v2064_v10  ;;  %54 = vrot.lane.b32.xlu1 %v2469_v7, %s2418_s27 }
 0x1ee   :  { %2251 = vmatpush3.bf16.msra.mxu0 %v753_v11  ;;  %2252 = vmatprep.mubr.msk.bf16.mxu0 %vm2410_vm2, %v2407_v14 }
 0x1ef   :  { %2262 = vmatprep.subr.bf16.mxu0 %v2407_v14 }
 0x1f1   :  { %60 = vrot.lane.b32.xlu1 %v49_v45, %s2418_s27 }
 0x1f5   :  { %2253 = vmatmul.mubr.msk.bf16.vlgmr.msra.gmra.mrb[24].mxu0 %vm80_vm1, %v2068_v15 }
 0x1f6   :  { %2263 = vmatpush3.bf16.msra.mxu0 %v858_v17  ;;  %2264 = vmatprep.mubr.msk.bf16.mxu0 %vm2410_vm2, %v2407_v14 }
 0x1f7   :  { %2274 = vmatprep.subr.bf16.mxu0 %v2407_v14 }
 0x1fd   :  { %2265 = vmatmul.mubr.msk.bf16.vlgmr.msra.gmra.mrb[28].mxu0 %vm80_vm1, %v2072_v21 }
 0x1fe   :  { %2275 = vmatpush3.bf16.msra.mxu0 %v963_v23  ;;  %2276 = vmatprep.mubr.msk.bf16.mxu0 %vm2410_vm2, %v2407_v14 }
 0x1ff   :  { %2080 = vmatprep.subr.msk.bf16.mxu0 %vm84_vm0, %v1093_v22 }
 0x205   :  { %2277 = vmatmul.mubr.msk.bf16.vlgmr.msra.gmra.mrb[32].mxu0 %vm80_vm1, %v2076_v8 }
 0x206   :  { %1101 = vmatpush1.bf16.msra.mxu0 %v1095_v24  ;;  %1132 = vmatprep.mubr.bf16.mxu0 %v2406_v3 }
 0x207   :  { %2292 = vmatprep.subr.bf16.mxu0 %v2407_v14 }
 0x20d   :  { %2081 = vmatmul.mubr.msk.bf16.vlgmr.msra.gmra.mrb[36].mxu0 %vm80_vm1, %v2480_v12  ;;  %v2054_v12 = vld [vmem:[%s2945_s3 + $0x8] sm:$0x3] }
 0x20e   :  { %2294 = vmatprep.mubr.msk.bf16.mxu0 %vm2410_vm2, %v2407_v14 }
 0x238   :  { %v253_v25 = vpop.f32.mrb[4].mxu0 }
 0x239   :  { %v2194_v26 = vpop.f32.mrb[5].mxu0 }
 0x23a   :  { %v256_v27 = vpop.f32.mrb[6].mxu0 }
 0x23b   :  { %v2195_v28 = vpop.f32.mrb[7].mxu0 }
 0x24f   :  { %v371_v29 = vpop.permute.xlu1 %370 }
 0x250   :  { %v373_v31 = vsel %vm2501_vm5, %v371_v29, 0.0 }
 0x251   :  { %v376_v32 = vpack.c.bf16 %v373_v31, %v373_v31 }
 0x253   :  { %v381_v33 = vsel %vm84_vm0, %v376_v32, 0  ;;  %v482_v3 = vpop.permute.xlu1 %481 }
 0x254   :  { %2209 = vmatpush3.bf16.msra.mxu1 %v381_v33  ;;  %v487_v34 = vsel %vm84_vm0, %v482_v3, 0 }
 0x255   :  { %2220 = vmatprep.subr.bf16.mxu1 %v2407_v14 }
 0x257   :  { %2211 = vmatmul.mubr.msk.bf16.vlgmr.msra.gmra.mrb[8].mxu1 %vm80_vm1, %v2054_v12  ;;  %v587_v35 = vpop.permute.xlu1 %586 }
 0x258   :  { %v589_v36 = vsel %vm2501_vm5, %v587_v35, 0.0  ;;  %2221 = vmatpush3.bf16.msra.mxu1 %v487_v34  ;;  %2222 = vmatprep.mubr.msk.bf16.mxu1 %vm2410_vm2, %v2407_v14 }
 0x259   :  { %2232 = vmatprep.subr.bf16.mxu1 %v2407_v14  ;;  %v592_v37 = vpack.c.bf16 %v589_v36, %v589_v36 }
 0x25b   :  { %v597_v39 = vsel %vm84_vm0, %v592_v37, 0  ;;  %v694_v41 = vpop.permute.xlu1 %693 }
 0x25c   :  { %v699_v43 = vsel %vm84_vm0, %v694_v41, 0 }
 0x25f   :  { %2223 = vmatmul.mubr.msk.bf16.vlgmr.msra.gmra.mrb[12].mxu1 %vm80_vm1, %v2058_v38 }
 0x260   :  { %2233 = vmatpush3.bf16.msra.mxu1 %v597_v39  ;;  %2234 = vmatprep.mubr.msk.bf16.mxu1 %vm2410_vm2, %v2407_v14 }
 0x261   :  { %2244 = vmatprep.subr.bf16.mxu1 %v2407_v14 }
 0x267   :  { %2235 = vmatmul.mubr.msk.bf16.vlgmr.msra.gmra.mrb[16].mxu1 %vm80_vm1, %v2062_v42 }
 0x268   :  { %2245 = vmatpush3.bf16.msra.mxu1 %v699_v43  ;;  %2246 = vmatprep.mubr.msk.bf16.mxu1 %vm2410_vm2, %v2407_v14 }
 0x269   :  { %2256 = vmatprep.subr.bf16.mxu1 %v2407_v14 }
 0x26f   :  { %2247 = vmatmul.mubr.msk.bf16.vlgmr.msra.gmra.mrb[20].mxu1 %vm80_vm1, %v2066_v44 }
 0x270   :  { %2258 = vmatprep.mubr.msk.bf16.mxu1 %vm2410_vm2, %v2407_v14 }
 0x2a8   :  { %v362_v46 = vpop.f32.mrb[8].mxu0 }
 0x2a9   :  { %v2206_v47 = vpop.f32.mrb[9].mxu0 }
 0x2aa   :  { %v365_v48 = vpop.f32.mrb[10].mxu0 }
 0x2ab   :  { %v2207_v49 = vpop.f32.mrb[11].mxu0 }
 0x2b0   :  { %v470_v50 = vpop.f32.mrb[12].mxu0 }
 0x2b1   :  { %v2218_v51 = vpop.f32.mrb[13].mxu0 }
 0x2b2   :  { %v473_v52 = vpop.f32.mrb[14].mxu0 }
 0x2b3   :  { %v2219_v53 = vpop.f32.mrb[15].mxu0 }
 0x2b5   :  { %v207_v54 = vpop.f32.mrb[0].mxu1 }
 0x2b6   :  { %v254_v55 = vadd.f32 %v253_v25, %v207_v54  ;;  %v2188_v56 = vpop.f32.mrb[1].mxu1 }
 0x2b7   :  { %v210_v57 = vpop.f32.mrb[2].mxu1 }
 0x2b8   :  { %v578_v59 = vpop.f32.mrb[16].mxu0  ;;  %v2189_v60 = vpop.f32.mrb[3].mxu1 }
 0x2b9   :  { %v2230_v61 = vpop.f32.mrb[17].mxu0 }
 0x2ba   :  { %v581_v63 = vpop.f32.mrb[18].mxu0 }
 0x2bb   :  { %v2231_v0 = vpop.f32.mrb[19].mxu0 }
 0x2bd   :  { %v305_v1 = vpop.f32.mrb[4].mxu1 }
 0x2be   :  { %v311_v2 = vadd.f32 %v305_v1, %v254_v55  ;;  %v2200_v4 = vpop.f32.mrb[5].mxu1 }
 0x2bf   :  { %v308_v5 = vpop.f32.mrb[6].mxu1 }
 0x2c0   :  { %v684_v6 = vpop.f32.mrb[20].mxu0  ;;  %v2201_v9 = vpop.f32.mrb[7].mxu1  ;;  %v368_v10 = vadd.f32 %v362_v46, %v311_v2 }
 0x2c1   :  { %v2242_v11 = vpop.f32.mrb[21].mxu0  ;;  %v55_v5 = vpop.permute.xlu1 %54 }
 0x2c2   :  { %v687_v15 = vpop.f32.mrb[22].mxu0 }
 0x2c3   :  { %v2243_v17 = vpop.f32.mrb[23].mxu0  ;;  %v51_v15 = vrot.slane %v2469_v7, 2 }
 0x2c4   :  { %v56_v17 = vrot.slane %v55_v5, 2 }
 0x2c8   :  { %v789_v18 = vpop.f32.mrb[24].mxu0 }
 0x2c9   :  { %v2254_v19 = vpop.f32.mrb[25].mxu0 }
 0x2ca   :  { %v792_v20 = vpop.f32.mrb[26].mxu0 }
 0x2cb   :  { %v2255_v21 = vpop.f32.mrb[27].mxu0 }
 0x2d0   :  { %v2685_v22 = vpop.f32.mrb[28].mxu0 }
 0x2d1   :  { %v2266_v23 = vpop.f32.mrb[29].mxu0 }
 0x2d2   :  { %v897_v8 = vpop.f32.mrb[30].mxu0 }
 0x2d3   :  { %v2267_v24 = vpop.f32.mrb[31].mxu0  ;;  %v53_v8 = vunpack.c.l.bf16 %v51_v15 }
 0x2d4   :  { %v58_v24 = vunpack.c.l.bf16 %v56_v17 }
 0x2d8   :  { %v2687_v25 = vpop.f32.mrb[32].mxu0 }
 0x2d9   :  { %v2278_v26 = vpop.f32.mrb[33].mxu0 }
 0x2da   :  { %v1002_v27 = vpop.f32.mrb[34].mxu0 }
 0x2db   :  { %v2279_v28 = vpop.f32.mrb[35].mxu0 }
 0x2dc   :  { %v61_v28 = vpop.permute.xlu1 %60 }
 0x2e0   :  { %v1134_v29 = vpop.f32.mrb[36].mxu0 }
 0x2e1   :  { %v1136_v31 = vpop.f32.mrb[37].mxu0  ;;  %v1135_v12 = vadd.f32 %v1134_v29, %v2484_v13 }
 0x2e2   :  { %v1137_v32 = vadd.f32 %v1136_v31, %v2484_v13  ;;  %v1138_v33 = vpop.f32.mrb[38].mxu0 }
 0x2e3   :  { %v1139_v3 = vpop.f32.mrb[39].mxu0  ;;  %v64_v33 = vmax.f32 %v53_v8, %v58_v24 }
 0x2e4   :  { %1153 = vrot.lane.b32.xlu0 %v1137_v32, %s2408_s1  ;;  %v63_v3 = vmax.f32 %v49_v45, %v61_v28  ;;  %v2074_v45 = vld [vmem:[%s2945_s3 + $0x1c] sm:$0x3] }
 0x2e8   :  { %1158 = vrot.lane.b32.xlu0 %v1137_v32, %s2409_s29 }
 0x2ec   :  { %1147 = vrot.lane.b32.xlu0 %v1135_v12, %s2409_s29 }
 0x2f0   :  { %1142 = vrot.lane.b32.xlu0 %v1135_v12, %s2408_s1 }
 0x2f4   :  { %796 = vrot.lane.b32.xlu0 %v2555_v58, %s2419_s2 }
 0x2f8   :  { %903 = vrot.lane.b32.xlu0 %v2566_v62, %s2414_s12 }
 0x32a   :  { %v417_v34 = vpop.f32.mrb[8].mxu1 }
 0x32b   :  { %v423_v35 = vadd.f32 %v417_v34, %v368_v10  ;;  %v2212_v36 = vpop.f32.mrb[9].mxu1 }
 0x32c   :  { %v420_v37 = vpop.f32.mrb[10].mxu1  ;;  %v65_v36 = vmax.f32 %v63_v3, %v64_v33 }
 0x32d   :  { %v2213_v38 = vpop.f32.mrb[11].mxu1  ;;  %v476_v39 = vadd.f32 %v470_v50, %v423_v35  ;;  %v2070_v35 = vld [vmem:[%s2945_s3 + $0x18] sm:$0x3] }
 0x32e   :  { %v66_v7 = vpack.c.bf16 %v65_v36, %v65_v36 }
 0x330   :  { %v1023_v38 = vsel %vm84_vm0, %v66_v7, 0  ;;  %v2101_v7 = vld [vmem:[%s2945_s3 + $0x14] sm:$0x3] }
 0x332   :  { %v523_v41 = vpop.f32.mrb[12].mxu1 }
 0x333   :  { %v529_v42 = vadd.f32 %v523_v41, %v476_v39  ;;  %v2224_v13 = vpop.f32.mrb[13].mxu1  ;;  %v1068_v39 = vunpack.c.l.bf16 %v2613_v16  ;;  %v2762_v41 = vld [vmem:[%s2946_s4] sm:$0x3] }
 0x334   :  { %v526_v43 = vpop.f32.mrb[14].mxu1  ;;  %v47_v13 = vld [vmem:[%s2948_s6] sm:$0xf] }
 0x335   :  { %v2225_v44 = vpop.f32.mrb[15].mxu1  ;;  %v584_v46 = vadd.f32 %v578_v59, %v529_v42  ;;  %v46_v42 = vld [vmem:[%s2947_s5] sm:$0xf] }
 0x33a   :  { %v633_v47 = vpop.f32.mrb[16].mxu1 }
 0x33b   :  { %v639_v48 = vadd.f32 %v633_v47, %v584_v46  ;;  %v2236_v49 = vpop.f32.mrb[17].mxu1  ;;  %v2082_v46 = vld [vmem:[%s2945_s3 + $0x2] sm:$0x3] }
 0x33c   :  { %v636_v51 = vpop.f32.mrb[18].mxu1 }
 0x33d   :  { %v2237_v58 = vpop.f32.mrb[19].mxu1  ;;  %v690_v52 = vadd.f32 %v684_v6, %v639_v48 }
 0x342   :  { %v735_v53 = vpop.f32.mrb[20].mxu1 }
 0x343   :  { %v741_v62 = vadd.f32 %v735_v53, %v690_v52  ;;  %v2248_v54 = vpop.f32.mrb[21].mxu1 }
 0x344   :  { %v738_v55 = vpop.f32.mrb[22].mxu1  ;;  %v2087_v54 = vld [vmem:[%s2945_s3 + $0x6] sm:$0x3] }
 0x345   :  { %v2249_v56 = vpop.f32.mrb[23].mxu1  ;;  %v2699_v57 = vadd.f32 %v789_v18, %v741_v62  ;;  %v1164_v18 = vld [vmem:[%s2945_s3] sm:$0x3] }
 0x346   :  { %v2085_v56 = vld [vmem:[%s2945_s3 + $0x4] sm:$0x3] }
 0x356   :  { %v1154_v50 = vpop.permute.xlu0 %1153 }
 0x357   :  { %v1156_v60 = vsel %vm136_vm3, 0.0, %v1154_v50 }
 0x358   :  { %v1157_v61 = vsel %vm138_vm4, %v1156_v60, 0.0 }
 0x359   :  { %v1167_v63 = vpack.c.bf16 %v1157_v61, %v1157_v61 }
 0x35a   :  { %v1159_v59 = vpop.permute.xlu0 %1158 }
 0x35b   :  { %v1161_v0 = vsel %vm136_vm3, 0.0, %v1159_v59  ;;  %1169 = vrot.lane.b32.xlu0 %v1167_v63, %s2416_s14 }
 0x35c   :  { %v1162_v1 = vsel %vm138_vm4, %v1161_v0, 0.0 }
 0x35d   :  { %v1163_v2 = vsel %vm2501_vm5, %v1162_v1, 0.0  ;;  %v1264_v4 = vpack.c.bf16 %v1162_v1, %v1162_v1 }
 0x35e   :  { %v1165_v6 = vpack.c.bf16 %v1163_v2, %v1163_v2  ;;  %v1148_v9 = vpop.permute.xlu0 %1147 }
 0x35f   :  { %v1150_v10 = vsel %vm136_vm3, 0.0, %v1148_v9  ;;  %1316 = vrot.lane.b32.xlu0 %v1157_v61, %s2411_s30  ;;  %1266 = vrot.lane.b32.xlu1 %v1264_v4, %s2416_s14 }
 0x360   :  { %v1221_v11 = vsel %vm84_vm0, %v1165_v6, 0  ;;  %v1151_v19 = vsel %vm138_vm4, %v1150_v10, 0.0 }
 0x361   :  { %2293 = vmatpush3.bf16.msra.mxu0 %v1221_v11  ;;  %v1476_v26 = vpack.c.bf16 %v1151_v19, %v1151_v19 }
 0x362   :  { %v1143_v20 = vpop.permute.xlu0 %1142  ;;  %2304 = vmatprep.subr.bf16.mxu0 %v2407_v14 }
 0x363   :  { %v1145_v21 = vsel %vm136_vm3, 0.0, %v1143_v20  ;;  %1370 = vrot.lane.b32.xlu1 %v1151_v19, %s2417_s19 }
 0x364   :  { %v1146_v23 = vsel %vm138_vm4, %v1145_v21, 0.0  ;;  %2295 = vmatmul.mubr.msk.bf16.vlgmr.msra.gmra.mrb[40].mxu0 %vm80_vm1, %v1164_v18  ;;  %v2095_v18 = vld [vmem:[%s2945_s3 + $0xe] sm:$0x3] }
 0x365   :  { %v1424_v27 = vpack.c.bf16 %v1146_v23, %v1146_v23  ;;  %2306 = vmatprep.mubr.msk.bf16.mxu0 %vm2410_vm2, %v2407_v14 }
 0x366   :  { %v797_v29 = vpop.permute.xlu0 %796 }
 0x367   :  { %v799_v31 = vsel %vm2501_vm5, %v797_v29, 0.0  ;;  %1426 = vrot.lane.b32.xlu0 %v1424_v27, %s2412_s8  ;;  %1478 = vrot.lane.b32.xlu1 %v1476_v26, %s2412_s8  ;;  %v2097_v29 = vld [vmem:[%s2945_s3 + $0x10] sm:$0x3] }
 0x368   :  { %v802_v32 = vpack.c.bf16 %v799_v31, %v799_v31 }
 0x36a   :  { %v807_v12 = vsel %vm84_vm0, %v802_v32, 0  ;;  %v904_v34 = vpop.permute.xlu0 %903 }
 0x36b   :  { %1528 = vrot.lane.b32.xlu0 %v1146_v23, %s2413_s9  ;;  %2257 = vmatpush3.bf16.msra.mxu1 %v807_v12  ;;  %v909_v37 = vsel %vm84_vm0, %v904_v34, 0  ;;  %v1070_v12 = vrot.slane %v2613_v16, 2 }
 0x36c   :  { %1582 = vrot.lane.b32.xlu1 %v1162_v1, %s2417_s19  ;;  %2268 = vmatprep.subr.bf16.mxu1 %v2407_v14  ;;  %v2091_v1 = vld [vmem:[%s2945_s3 + $0xa] sm:$0x3] }
 0x36e   :  { %2259 = vmatmul.mubr.msk.bf16.vlgmr.msra.gmra.mrb[24].mxu1 %vm80_vm1, %v2070_v35 }
 0x36f   :  { %1636 = vrot.lane.b32.xlu0 %v1167_v63, %s2412_s8  ;;  %2269 = vmatpush3.bf16.msra.mxu1 %v909_v37 }
 0x370   :  { %1686 = vrot.lane.b32.xlu1 %v1264_v4, %s2412_s8  ;;  %2270 = vmatprep.mubr.msk.bf16.mxu1 %vm2410_vm2, %v2407_v14  ;;  %v2089_v4 = vld [vmem:[%s2945_s3 + $0x8] sm:$0x3] }
 0x371   :  { %2280 = vmatprep.subr.bf16.mxu1 %v2407_v14 }
 0x373   :  { %1735 = vrot.lane.b32.xlu0 %v1157_v61, %s2413_s9 }
 0x374   :  { %1788 = vrot.lane.b32.xlu1 %v1151_v19, %s2419_s2  ;;  %v2093_v19 = vld [vmem:[%s2945_s3 + $0xc] sm:$0x3] }
 0x376   :  { %2271 = vmatmul.mubr.msk.bf16.vlgmr.msra.gmra.mrb[28].mxu1 %vm80_vm1, %v2074_v45  ;;  %v1072_v45 = vunpack.c.l.bf16 %v1070_v12 }
 0x377   :  { %1073 = vrot.lane.b32.xlu0 %v2613_v16, %s2418_s27  ;;  %2281 = vmatpush3.bf16.msra.mxu1 %v1023_v38 }
 0x378   :  { %1842 = vrot.lane.b32.xlu1 %v1424_v27, %s2414_s12  ;;  %2282 = vmatprep.mubr.msk.bf16.mxu1 %vm2410_vm2, %v2407_v14  ;;  %v2099_v27 = vld [vmem:[%s2945_s3 + $0x12] sm:$0x3] }
 0x379   :  { %2286 = vmatprep.subr.bf16.mxu1 %v2407_v14 }
 0x37b   :  { %1892 = vrot.lane.b32.xlu0 %v1476_v26, %s2414_s12 }
 0x37c   :  { %1079 = vrot.lane.b32.xlu1 %v1068_v39, %s2418_s27 }
 0x37e   :  { %2283 = vmatmul.mubr.msk.bf16.vlgmr.msra.gmra.mrb[32].mxu1 %vm80_vm1, %v2762_v41 }
 0x37f   :  { %1941 = vrot.lane.b32.xlu0 %v1146_v23, %s2415_s13  ;;  %2288 = vmatprep.mubr.msk.bf16.mxu1 %vm2410_vm2, %v2407_v14 }
 0x380   :  { %1008 = vperm.xlu1 %2404, %v46_v42  }
 0x383   :  { %1016 = vperm.xlu0 %2403, %v47_v13  }
 0x3cd   :  { %v1170_v43 = vpop.permute.xlu0 %1169 }
 0x3ce   :  { %v1175_v44 = vsel %vm84_vm0, %v1170_v43, 0 }
 0x3cf   :  { %2287 = vmatpush3.bf16.msra.mxu1 %v1175_v44 }
 0x3d0   :  { %2298 = vmatprep.subr.bf16.mxu1 %v2407_v14 }
 0x3d1   :  { %v1317_v47 = vpop.permute.xlu0 %1316  ;;  %v1267_v48 = vpop.permute.xlu1 %1266 }
 0x3d2   :  { %v1319_v49 = vsel %vm2532_vm6, %v1317_v47, 0.0  ;;  %v1272_v51 = vsel %vm84_vm0, %v1267_v48, 0  ;;  %2289 = vmatmul.mubr.msk.bf16.vlgmr.msra.gmra.mrb[36].mxu1 %vm80_vm1, %v2082_v46 }
 0x3d3   :  { %v1321_v58 = vpack.c.bf16 %v1319_v49, %v1319_v49  ;;  %2299 = vmatpush3.bf16.msra.mxu1 %v1272_v51  ;;  %2300 = vmatprep.mubr.msk.bf16.mxu1 %vm2410_vm2, %v2407_v14  ;;  %v2105_v49 = vld [vmem:[%s2945_s3 + $0x18] sm:$0x3] }
 0x3d4   :  { %2310 = vmatprep.subr.bf16.mxu1 %v2407_v14 }
 0x3d5   :  { %v1326_v52 = vsel %vm84_vm0, %v1321_v58, 0  ;;  %v1371_v53 = vpop.permute.xlu1 %1370 }
 0x3d6   :  { %v1373_v62 = vsel %vm2501_vm5, %v1371_v53, 0.0  ;;  %2305 = vmatpush3.bf16.msra.mxu0 %v1326_v52  ;;  %v2109_v53 = vld [vmem:[%s2945_s3 + $0x1c] sm:$0x3] }
 0x3d7   :  { %v1375_v55 = vpack.c.bf16 %v1373_v62, %v1373_v62  ;;  %2316 = vmatprep.subr.bf16.mxu0 %v2407_v14 }
 0x3d9   :  { %v1380_v50 = vsel %vm84_vm0, %v1375_v55, 0  ;;  %2307 = vmatmul.mubr.msk.bf16.vlgmr.msra.gmra.mrb[44].mxu0 %vm80_vm1, %v2087_v54  ;;  %v1427_v60 = vpop.permute.xlu0 %1426  ;;  %v1479_v63 = vpop.permute.xlu1 %1478 }
 0x3da   :  { %v1432_v61 = vsel %vm84_vm0, %v1427_v60, 0  ;;  %2301 = vmatmul.mubr.msk.bf16.vlgmr.msra.gmra.mrb[40].mxu1 %vm80_vm1, %v2085_v56  ;;  %2318 = vmatprep.mubr.msk.bf16.mxu0 %vm2410_vm2, %v2407_v14  ;;  %v1484_v10 = vsel %vm84_vm0, %v1479_v63, 0 }
 0x3db   :  { %2311 = vmatpush3.bf16.msra.mxu1 %v1380_v50  ;;  %2317 = vmatpush3.bf16.msra.mxu0 %v1432_v61 }
 0x3dc   :  { %2328 = vmatprep.subr.bf16.mxu0 %v2407_v14  ;;  %2312 = vmatprep.mubr.msk.bf16.mxu1 %vm2410_vm2, %v2407_v14 }
 0x3dd   :  { %v1529_v59 = vpop.permute.xlu0 %1528  ;;  %2322 = vmatprep.subr.bf16.mxu1 %v2407_v14 }
 0x3de   :  { %v1531_v0 = vsel %vm2532_vm6, %v1529_v59, 0.0  ;;  %v1583_v5 = vpop.permute.xlu1 %1582 }
 0x3df   :  { %v1533_v2 = vpack.c.bf16 %v1531_v0, %v1531_v0  ;;  %v1585_v11 = vsel %vm2501_vm5, %v1583_v5, 0.0 }
 0x3e0   :  { %v1587_v17 = vpack.c.bf16 %v1585_v11, %v1585_v11 }
 0x3e1   :  { %v1538_v6 = vsel %vm84_vm0, %v1533_v2, 0  ;;  %2319 = vmatmul.mubr.msk.bf16.vlgmr.msra.gmra.mrb[48].mxu0 %vm80_vm1, %v2091_v1  ;;  %v1637_v9 = vpop.permute.xlu0 %1636 }
 0x3e2   :  { %2313 = vmatmul.mubr.msk.bf16.vlgmr.msra.gmra.mrb[44].mxu1 %vm80_vm1, %v2089_v4  ;;  %2329 = vmatpush3.bf16.msra.mxu0 %v1538_v6  ;;  %v1642_v20 = vsel %vm84_vm0, %v1637_v9, 0  ;;  %v1687_v21 = vpop.permute.xlu1 %1686  ;;  %v1592_v23 = vsel %vm84_vm0, %v1587_v17, 0 }
 0x3e3   :  { %2323 = vmatpush3.bf16.msra.mxu1 %v1484_v10  ;;  %2330 = vmatprep.mubr.msk.bf16.mxu0 %vm2410_vm2, %v2407_v14  ;;  %v1692_v33 = vsel %vm84_vm0, %v1687_v21, 0 }
 0x3e4   :  { %2340 = vmatprep.subr.bf16.mxu0 %v2407_v14  ;;  %2324 = vmatprep.mubr.msk.bf16.mxu1 %vm2410_vm2, %v2407_v14 }
 0x3e5   :  { %v1736_v15 = vpop.permute.xlu0 %1735  ;;  %2334 = vmatprep.subr.bf16.mxu1 %v2407_v14 }
 0x3e6   :  { %v1738_v8 = vsel %vm2532_vm6, %v1736_v15, 0.0  ;;  %v1789_v28 = vpop.permute.xlu1 %1788 }
 0x3e7   :  { %v1740_v26 = vpack.c.bf16 %v1738_v8, %v1738_v8  ;;  %v1791_v3 = vsel %vm2501_vm5, %v1789_v28, 0.0 }
 0x3e8   :  { %v1793_v36 = vpack.c.bf16 %v1791_v3, %v1791_v3 }
 0x3e9   :  { %2331 = vmatmul.mubr.msk.bf16.vlgmr.msra.gmra.mrb[52].mxu0 %vm80_vm1, %v2095_v18  ;;  %v1074_v24 = vpop.permute.xlu0 %1073  ;;  %v1745_v31 = vsel %vm84_vm0, %v1740_v26, 0 }
 0x3ea   :  { %2341 = vmatpush3.bf16.msra.mxu0 %v1642_v20  ;;  %2325 = vmatmul.mubr.msk.bf16.vlgmr.msra.gmra.mrb[48].mxu1 %vm80_vm1, %v2093_v19  ;;  %v1075_v34 = vrot.slane %v1074_v24, 2  ;;  %v1843_v35 = vpop.permute.xlu1 %1842  ;;  %v1798_v43 = vsel %vm84_vm0, %v1793_v36, 0 }
 0x3eb   :  { %2335 = vmatpush3.bf16.msra.mxu1 %v1592_v23  ;;  %2342 = vmatprep.mubr.msk.bf16.mxu0 %vm2410_vm2, %v2407_v14  ;;  %v1848_v42 = vsel %vm84_vm0, %v1843_v35, 0 }
 0x3ec   :  { %2352 = vmatprep.subr.bf16.mxu0 %v2407_v14  ;;  %2336 = vmatprep.mubr.msk.bf16.mxu1 %vm2410_vm2, %v2407_v14  ;;  %v1077_v38 = vunpack.c.l.bf16 %v1075_v34 }
 0x3ed   :  { %2346 = vmatprep.subr.bf16.mxu1 %v2407_v14  ;;  %v1893_v32 = vpop.permute.xlu0 %1892 }
 0x3ee   :  { %v1080_v13 = vpop.permute.xlu1 %1079  ;;  %v1083_v46 = vmax.f32 %v1072_v45, %v1077_v38  ;;  %v1898_v52 = vsel %vm84_vm0, %v1893_v32, 0 }
 0x3ef   :  { %v1082_v47 = vmax.f32 %v1068_v39, %v1080_v13  ;;  %v2111_v39 = vld [vmem:[%s2945_s3 + $0x1e] sm:$0x3] }
 0x3f1   :  { %2343 = vmatmul.mubr.msk.bf16.vlgmr.msra.gmra.mrb[56].mxu0 %vm80_vm1, %v2099_v27  ;;  %v1942_v37 = vpop.permute.xlu0 %1941  ;;  %v1084_v51 = vmax.f32 %v1082_v47, %v1083_v46 }
 0x3f2   :  { %2353 = vmatpush3.bf16.msra.mxu0 %v1745_v31  ;;  %2337 = vmatmul.mubr.msk.bf16.vlgmr.msra.gmra.mrb[52].mxu1 %vm80_vm1, %v2097_v29  ;;  %v1944_v44 = vsel %vm2532_vm6, %v1942_v37, 0.0 }
 0x3f3   :  { %2347 = vmatpush3.bf16.msra.mxu1 %v1692_v33  ;;  %2354 = vmatprep.mubr.msk.bf16.mxu0 %vm2410_vm2, %v2407_v14  ;;  %v1946_v48 = vpack.c.bf16 %v1944_v44, %v1944_v44  ;;  %v1085_v16 = vpack.c.bf16 %v1084_v51, %v1084_v51 }
 0x3f4   :  { %2364 = vmatprep.subr.bf16.mxu0 %v2407_v14  ;;  %2348 = vmatprep.mubr.msk.bf16.mxu1 %vm2410_vm2, %v2407_v14 }
 0x3f5   :  { %2358 = vmatprep.subr.bf16.mxu1 %v2407_v14  ;;  %v1951_v58 = vsel %vm84_vm0, %v1946_v48, 0  ;;  %v1998_v62 = vsel %vm84_vm0, %v1085_v16, 0 }
 0x3f9   :  { %2355 = vmatmul.mubr.msk.bf16.vlgmr.msra.gmra.mrb[60].mxu0 %vm80_vm1, %v2103_v30 }
 0x3fa   :  { %2365 = vmatpush3.bf16.msra.mxu0 %v1848_v42  ;;  %2349 = vmatmul.mubr.msk.bf16.vlgmr.msra.gmra.mrb[56].mxu1 %vm80_vm1, %v2101_v7 }
 0x3fb   :  { %2359 = vmatpush3.bf16.msra.mxu1 %v1798_v43  ;;  %2366 = vmatprep.mubr.msk.bf16.mxu0 %vm2410_vm2, %v2407_v14 }
 0x3fc   :  { %2376 = vmatprep.subr.bf16.mxu0 %v2407_v14  ;;  %2360 = vmatprep.mubr.msk.bf16.mxu1 %vm2410_vm2, %v2407_v14 }
 0x3fd   :  { %2370 = vmatprep.subr.bf16.mxu1 %v2407_v14 }
 0x3ff   :  { %v2917_v6 = vpop.permute.xlu1 %1008 }
 0x401   :  { %2367 = vmatmul.mubr.msk.bf16.vlgmr.msra.gmra.mrb[64].mxu0 %vm80_vm1, %v2107_v40 }
 0x402   :  { %2377 = vmatpush3.bf16.msra.mxu0 %v1951_v58  ;;  %2361 = vmatmul.mubr.msk.bf16.vlgmr.msra.gmra.mrb[60].mxu1 %vm80_vm1, %v2105_v49 }
 0x403   :  { %2371 = vmatpush3.bf16.msra.mxu1 %v1898_v52  ;;  %2372 = vmatprep.mubr.msk.bf16.mxu1 %vm2410_vm2, %v2407_v14 }
 0x404   :  { %2378 = vmatprep.mubr.msk.bf16.mxu0 %vm2410_vm2, %v2407_v14  ;;  %2382 = vmatprep.subr.bf16.mxu1 %v2407_v14 }
 0x409   :  { %2379 = vmatmul.mubr.msk.bf16.vlgmr.msra.gmra.mrb[68].mxu0 %vm80_vm1, %v2111_v39 }
 0x40a   :  { %2373 = vmatmul.mubr.msk.bf16.vlgmr.msra.gmra.mrb[64].mxu1 %vm80_vm1, %v2109_v53 }
 0x40b   :  { %2383 = vmatpush3.bf16.msra.mxu1 %v1998_v62  ;;  %2384 = vmatprep.mubr.msk.bf16.mxu1 %vm2410_vm2, %v2407_v14 }
 0x412   :  { %2385 = vmatmul.mubr.msk.bf16.vlgmr.msra.gmra.mrb[68].mxu1 %vm80_vm1, %v2762_v41 }
 0x437   :  { %v1257_v54 = vpop.f32.mrb[40].mxu0 }
 0x438   :  { %v2296_v55 = vpop.f32.mrb[41].mxu0 }
 0x439   :  { %v1260_v56 = vpop.f32.mrb[42].mxu0 }
 0x43a   :  { %v2297_v50 = vpop.f32.mrb[43].mxu0 }
 0x441   :  { %v843_v60 = vpop.f32.mrb[24].mxu1 }
 0x442   :  { %v849_v61 = vadd.f32 %v843_v60, %v2699_v57  ;;  %v2260_v63 = vpop.f32.mrb[25].mxu1  ;;  %v2925_v57 = vpop.permute.xlu0 %1016 }
 0x443   :  { %v846_v59 = vpop.f32.mrb[26].mxu1 }
 0x444   :  { %v2261_v0 = vpop.f32.mrb[27].mxu1  ;;  %v900_v1 = vadd.f32 %v2685_v22, %v849_v61 }
 0x449   :  { %v945_v2 = vpop.f32.mrb[28].mxu1 }
 0x44a   :  { %v951_v4 = vadd.f32 %v945_v2, %v900_v1  ;;  %v2272_v5 = vpop.f32.mrb[29].mxu1 }
 0x44b   :  { %v948_v14 = vpop.f32.mrb[30].mxu1 }
 0x44c   :  { %v1005_v41 = vadd.f32 %v2687_v25, %v951_v4  ;;  %v2273_v9 = vpop.f32.mrb[31].mxu1 }
 0x44e   :  { %v1011_v10 = vadd.f32 %v2917_v6, %v1005_v41 }
 0x450   :  { %1013 = vst.msk [vmem:[%s2949_s7] sm:$0xf] %vm1012_vm7, %v1011_v10 }
 0x451   :  { %v1059_v22 = vpop.f32.mrb[32].mxu1 }
 0x452   :  { %v1060_v11 = vadd.f32 %v1059_v22, %v2925_v57  ;;  %v2284_v15 = vpop.f32.mrb[33].mxu1 }
 0x453   :  { %v1062_v17 = vpop.f32.mrb[34].mxu1 }
 0x454   :  { %1065 = vst.msk [vmem:[%s2949_s7 + $0x4] sm:$0xf] %vm1012_vm7, %v1060_v11  ;;  %v2285_v25 = vpop.f32.mrb[35].mxu1 }
 0x4a5   :  { %v1211_v18 = vpop.f32.mrb[36].mxu1 }
 0x4a6   :  { %v2290_v19 = vpop.f32.mrb[37].mxu1  ;;  %v1258_v20 = vadd.f32 %v1257_v54, %v1211_v18 }
 0x4a7   :  { %v1214_v21 = vpop.f32.mrb[38].mxu1 }
 0x4a8   :  { %v2291_v23 = vpop.f32.mrb[39].mxu1 }
 0x4ac   :  { %v1362_v8 = vpop.f32.mrb[44].mxu0 }
 0x4ad   :  { %v1308_v24 = vpop.f32.mrb[40].mxu1  ;;  %v2308_v26 = vpop.f32.mrb[45].mxu0 }
 0x4ae   :  { %v1314_v27 = vadd.f32 %v1308_v24, %v1258_v20  ;;  %v2302_v28 = vpop.f32.mrb[41].mxu1  ;;  %v1365_v29 = vpop.f32.mrb[46].mxu0 }
 0x4af   :  { %v1311_v31 = vpop.f32.mrb[42].mxu1  ;;  %v2309_v32 = vpop.f32.mrb[47].mxu0 }
 0x4b0   :  { %v1368_v33 = vadd.f32 %v1362_v8, %v1314_v27  ;;  %v2303_v3 = vpop.f32.mrb[43].mxu1 }
 0x4b4   :  { %v1468_v12 = vpop.f32.mrb[48].mxu0 }
 0x4b5   :  { %v1416_v34 = vpop.f32.mrb[44].mxu1  ;;  %v2320_v35 = vpop.f32.mrb[49].mxu0 }
 0x4b6   :  { %v1422_v36 = vadd.f32 %v1416_v34, %v1368_v33  ;;  %v2314_v30 = vpop.f32.mrb[45].mxu1  ;;  %v1471_v37 = vpop.f32.mrb[50].mxu0 }
 0x4b7   :  { %v1419_v7 = vpop.f32.mrb[46].mxu1  ;;  %v2321_v45 = vpop.f32.mrb[51].mxu0 }
 0x4b8   :  { %v1474_v38 = vadd.f32 %v1468_v12, %v1422_v36  ;;  %v2315_v42 = vpop.f32.mrb[47].mxu1 }
 0x4bc   :  { %v1574_v13 = vpop.f32.mrb[52].mxu0 }
 0x4bd   :  { %v1520_v43 = vpop.f32.mrb[48].mxu1  ;;  %v2332_v44 = vpop.f32.mrb[53].mxu0 }
 0x4be   :  { %v1526_v46 = vadd.f32 %v1520_v43, %v1474_v38  ;;  %v2326_v47 = vpop.f32.mrb[49].mxu1  ;;  %v1577_v48 = vpop.f32.mrb[54].mxu0 }
 0x4bf   :  { %v1523_v40 = vpop.f32.mrb[50].mxu1  ;;  %v2333_v49 = vpop.f32.mrb[55].mxu0 }
 0x4c0   :  { %v1580_v51 = vadd.f32 %v1574_v13, %v1526_v46  ;;  %v2327_v58 = vpop.f32.mrb[51].mxu1 }
 0x4c4   :  { %v1678_v52 = vpop.f32.mrb[56].mxu0 }
 0x4c5   :  { %v1628_v16 = vpop.f32.mrb[52].mxu1  ;;  %v2344_v39 = vpop.f32.mrb[57].mxu0 }
 0x4c6   :  { %v1634_v53 = vadd.f32 %v1628_v16, %v1580_v51  ;;  %v2338_v62 = vpop.f32.mrb[53].mxu1  ;;  %v1681_v54 = vpop.f32.mrb[58].mxu0 }
 0x4c7   :  { %v1631_v55 = vpop.f32.mrb[54].mxu1  ;;  %v2345_v56 = vpop.f32.mrb[59].mxu0 }
 0x4c8   :  { %v1684_v50 = vadd.f32 %v1678_v52, %v1634_v53  ;;  %v2339_v60 = vpop.f32.mrb[55].mxu1 }
 0x4cc   :  { %v1781_v61 = vpop.f32.mrb[60].mxu0 }
 0x4cd   :  { %v1728_v63 = vpop.f32.mrb[56].mxu1  ;;  %v2356_v59 = vpop.f32.mrb[61].mxu0 }
 0x4ce   :  { %v1734_v0 = vadd.f32 %v1728_v63, %v1684_v50  ;;  %v2350_v1 = vpop.f32.mrb[57].mxu1  ;;  %v1784_v2 = vpop.f32.mrb[62].mxu0 }
 0x4cf   :  { %v1731_v4 = vpop.f32.mrb[58].mxu1  ;;  %v2357_v5 = vpop.f32.mrb[63].mxu0 }
 0x4d0   :  { %v1787_v14 = vadd.f32 %v1781_v61, %v1734_v0  ;;  %v2351_v41 = vpop.f32.mrb[59].mxu1 }
 0x4d4   :  { %v1884_v9 = vpop.f32.mrb[64].mxu0 }
 0x4d5   :  { %v1834_v10 = vpop.f32.mrb[60].mxu1  ;;  %v2368_v22 = vpop.f32.mrb[65].mxu0 }
 0x4d6   :  { %v1840_v11 = vadd.f32 %v1834_v10, %v1787_v14  ;;  %v2362_v15 = vpop.f32.mrb[61].mxu1  ;;  %v1887_v17 = vpop.f32.mrb[66].mxu0 }
 0x4d7   :  { %v1837_v25 = vpop.f32.mrb[62].mxu1  ;;  %v2369_v18 = vpop.f32.mrb[67].mxu0 }
 0x4d8   :  { %v1890_v19 = vadd.f32 %v1884_v9, %v1840_v11  ;;  %v2363_v20 = vpop.f32.mrb[63].mxu1 }
 0x4dc   :  { %v1987_v21 = vpop.f32.mrb[68].mxu0 }
 0x4dd   :  { %v1934_v23 = vpop.f32.mrb[64].mxu1  ;;  %v2380_v8 = vpop.f32.mrb[69].mxu0 }
 0x4de   :  { %v1940_v24 = vadd.f32 %v1934_v23, %v1890_v19  ;;  %v2374_v26 = vpop.f32.mrb[65].mxu1  ;;  %v1990_v27 = vpop.f32.mrb[70].mxu0 }
 0x4df   :  { %v1937_v28 = vpop.f32.mrb[66].mxu1  ;;  %v2381_v29 = vpop.f32.mrb[71].mxu0 }
 0x4e0   :  { %v1993_v31 = vadd.f32 %v1987_v21, %v1940_v24  ;;  %v2375_v32 = vpop.f32.mrb[67].mxu1 }
 0x4e2   :  { %v1994_v33 = vadd.f32 %v1993_v31, %v2917_v6 }
 0x4e4   :  { %2113 = vst.msk [vmem:[%s2949_s7 + $0x8] sm:$0xf] %vm1012_vm7, %v1994_v33 }
 0x4e5   :  { %v2034_v3 = vpop.f32.mrb[68].mxu1 }
 0x4e6   :  { %v2035_v12 = vadd.f32 %v2034_v3, %v2925_v57  ;;  %v2386_v34 = vpop.f32.mrb[69].mxu1 }
 0x4e7   :  { %v2037_v35 = vpop.f32.mrb[70].mxu1 }
 0x4e8   :  { %2115 = vst.msk [vmem:[%s2949_s7 + $0xc] sm:$0xf] %vm1012_vm7, %v2035_v12  ;;  %v2387_v36 = vpop.f32.mrb[71].mxu1 }

</bundles_post_ra>
